<compile_context>
chip_gen: v7x
topology: tpu7x:2x2x1
jax: 0.10.0
libtpu: 0.0.40
codegen_flags: <defaults>
</compile_context>

<pallas_src>
import functools

import jax
import jax.numpy as jnp
from jax.experimental import pallas as pl
from jax.experimental.pallas import tpu as pltpu

LANE = 128  # one full lane group


# ----------------------------------------------------------------------------
# In-kernel helpers (overflow-safe, EUP-friendly, f32)
# ----------------------------------------------------------------------------
def _sigmoid(x):
    # sigmoid(x) = 0.5*(tanh(x/2)+1): never overflows, lowers to the EUP tanh.
    return 0.5 * (jnp.tanh(0.5 * x) + 1.0)


def _silu(x):
    return x * _sigmoid(x)


# ----------------------------------------------------------------------------
# The single fused Pallas kernel: conv1 + conv2 + head + sigmoid + YOLO decode
# ----------------------------------------------------------------------------
def _fused_detect_kernel(x0_ref, p1_ref, w1_ref, b1_ref,
                         p2_ref, w2_ref, b2_ref,
                         w3_ref, b3_ref,
                         adec_ref, bdec_ref, cdec_ref,
                         out_ref, *, c0, c1, r1, r1_pad, r2, taps):
    f32 = jnp.float32
    bf16 = jnp.bfloat16

    x0 = x0_ref[...]                                    # (H0*W0, c0) bf16, no lane padding

    # ---------------- Conv1 (3x3 / s2, SiLU) ----------------
    # One stacked gather matmul over all 9 taps (rows are tap-major).
    g1 = jnp.dot(p1_ref[...], x0, preferred_element_type=f32)           # (taps*r1, c0) f32
    # Lane-pack the tap slices into an im2col block: column = t*c0 + c.
    # P is 0/1 selection, so this is an exact permutation of the bf16 input values.
    pieces = [g1[t * r1:(t + 1) * r1, :] for t in range(taps)]
    fill = LANE - taps * c0
    if fill > 0:
        pieces.append(jnp.zeros((r1, fill), f32))
    im1 = jnp.concatenate(pieces, axis=1).astype(bf16)                   # (r1, 128) bf16
    a1 = jnp.dot(im1, w1_ref[...], preferred_element_type=f32) + b1_ref[...]
    x1 = _silu(a1).astype(bf16)                                          # (r1, 128) bf16

    # Zero-pad x1 rows so the conv2 selector operand stays a full 128-lane group.
    if r1_pad > r1:
        x1 = jnp.concatenate([x1, jnp.zeros((r1_pad - r1, LANE), bf16)], axis=0)

    # ---------------- Conv2 (3x3 / s2, SiLU) ----------------
    g2 = jnp.dot(p2_ref[...], x1, preferred_element_type=f32)            # (taps*r2, 128) f32
    pieces = [g2[t * r2:(t + 1) * r2, :c1] for t in range(taps)]
    fill = LANE - taps * c1
    if fill > 0:
        pieces.append(jnp.zeros((r2, fill), f32))
    im2 = jnp.concatenate(pieces, axis=1).astype(bf16)                   # (r2, 128) bf16
    a2 = jnp.dot(im2, w2_ref[...], preferred_element_type=f32) + b2_ref[...]
    x2 = _silu(a2).astype(bf16)                                          # (r2, 128) bf16

    # ---- 1x1 Detect head: all na*no channels in ONE lane group + sigmoid + decode ----
    raw = jnp.dot(x2, w3_ref[...], preferred_element_type=f32) + b3_ref[...]   # (r2, 128)
    s = _sigmoid(raw)
    dec = adec_ref[...] * s + bdec_ref[...] + cdec_ref[...] * (s * s)    # y = A*s + B + C*s^2
    out_ref[...] = dec.astype(out_ref.dtype)                             # one lane-dense store


# ----------------------------------------------------------------------------
# Host-side (init-time) constant builders
# ----------------------------------------------------------------------------
def _conv_selectors(ih, iw, oh, ow, k, stride, pad):
    """Stacked 0/1 selection matrix (k*k*oh*ow, ih*iw), rows tap-major.

    Zero rows encode the implicit zero padding of the convolution."""
    t = jnp.arange(k * k)
    ky = (t // k)[:, None]
    kx = (t % k)[:, None]
    r = jnp.arange(oh * ow)
    oy = (r // ow)[None, :]
    ox = (r % ow)[None, :]
    iy = oy * stride + ky - pad
    ix = ox * stride + kx - pad
    valid = (iy >= 0) & (iy < ih) & (ix >= 0) & (ix < iw)
    src = jnp.clip(iy, 0, ih - 1) * iw + jnp.clip(ix, 0, iw - 1)
    sel = jax.nn.one_hot(src, ih * iw, dtype=jnp.float32) * valid[..., None]
    return sel.reshape(k * k * oh * ow, ih * iw)


def _pack_conv_weight(w):
    """torch-layout (Cout, Cin, K, K) -> dense (128, 128) bf16, row = tap*Cin + cin."""
    cout, cin, kh, kw = w.shape
    taps2d = jnp.transpose(w, (2, 3, 1, 0)).reshape(kh * kw * cin, cout)
    return jnp.pad(taps2d, ((0, LANE - kh * kw * cin), (0, LANE - cout))).astype(jnp.bfloat16)


def _bias_row(b):
    return jnp.pad(b, (0, LANE - b.shape[0])).reshape(1, LANE).astype(jnp.float32)


# ----------------------------------------------------------------------------
# Fused forward (jitted; pallas_call + minimal boundary layout glue)
# ----------------------------------------------------------------------------
def _forward_impl(im, consts, *, na, no, hw_out, r1, r1_pad, c1, taps, out_dtype):
    (p1, w1p, b1r, p2, w2p, b2r, w3m, b3r, adec, bdec, cdec) = consts
    bsz, ch, h, w = im.shape

    # bf16 first, then NCHW -> (B, H*W, Cin) — no host-side lane padding (only real
    # channels are DMA'd into the kernel).
    x0 = jnp.transpose(im.astype(jnp.bfloat16), (0, 2, 3, 1)).reshape(bsz, h * w, ch)

    kernel = functools.partial(_fused_detect_kernel,
                               c0=ch, c1=c1, r1=r1, r1_pad=r1_pad, r2=hw_out, taps=taps)
    out = pl.pallas_call(
        kernel,
        out_shape=jax.ShapeDtypeStruct((bsz, hw_out, LANE), out_dtype),
        grid=(bsz,),
        in_specs=[
            pl.BlockSpec((None, h * w, ch), lambda b: (b, 0, 0)),   # per-batch input
            pl.BlockSpec(p1.shape, lambda b: (0, 0)),               # VMEM-resident constants
            pl.BlockSpec(w1p.shape, lambda b: (0, 0)),
            pl.BlockSpec(b1r.shape, lambda b: (0, 0)),
            pl.BlockSpec(p2.shape, lambda b: (0, 0)),
            pl.BlockSpec(w2p.shape, lambda b: (0, 0)),
            pl.BlockSpec(b2r.shape, lambda b: (0, 0)),
            pl.BlockSpec(w3m.shape, lambda b: (0, 0)),
            pl.BlockSpec(b3r.shape, lambda b: (0, 0)),
            pl.BlockSpec(adec.shape, lambda b: (0, 0)),
            pl.BlockSpec(bdec.shape, lambda b: (0, 0)),
            pl.BlockSpec(cdec.shape, lambda b: (0, 0)),
        ],
        out_specs=pl.BlockSpec((None, hw_out, LANE), lambda b: (b, 0, 0)),
        compiler_params=pltpu.CompilerParams(
            dimension_semantics=("parallel",),        # >=2 steps -> both v7x TensorCores
            vmem_limit_bytes=32 * 1024 * 1024,        # explicit; constants are <1 MiB here
        ),
    )(x0, p1, w1p, b1r, p2, w2p, b2r, w3m, b3r, adec, bdec, cdec)

    # Boundary glue on a tiny array: lanes (a*no + c) -> YOLO (anchor, y, x, channel) order.
    y = out[:, :, :na * no].reshape(bsz, hw_out, na, no)
    y = jnp.transpose(y, (0, 2, 1, 3)).reshape(bsz, na * hw_out, no)
    return y


# ----------------------------------------------------------------------------
# Synthetic YOLO-style DetectMultiBackend
# ----------------------------------------------------------------------------
class DetectMultiBackendPallas:
    def __init__(self, fp16=False, seed=0, imgsz=16):
        self.pt, self.onnx = True, False   # "PyTorch" backend branch of the original
        self.fp16 = bool(fp16)             # TODO(synk): torch .half() maps to bf16 on TPU
        self.nc = 2
        self.na = 3
        self.no = self.nc + 5
        self.stride = 4                    # total downsample of this tiny synthetic net
        self.imgsz = int(imgsz)
        assert self.imgsz % self.stride == 0

        key = jax.random.PRNGKey(seed)
        k1, k2, k3 = jax.random.split(key, 3)
        c0, c1, c2 = 3, 8, 16
        self._c0, self._c1, self._c2 = c0, c1, c2
        self.w1 = jax.random.normal(k1, (c1, c0, 3, 3), jnp.float32) * 0.1
        self.b1 = jnp.linspace(-0.1, 0.1, c1, dtype=jnp.float32)
        self.w2 = jax.random.normal(k2, (c2, c1, 3, 3), jnp.float32) * 0.1
        self.b2 = jnp.linspace(-0.1, 0.1, c2, dtype=jnp.float32)
        self.w3 = jax.random.normal(k3, (self.na * self.no, c2, 1, 1), jnp.float32) * 0.1
        self.b3 = jnp.zeros((self.na * self.no,), jnp.float32)
        self.anchors = jnp.array([[1.25, 1.625], [2.0, 3.75], [4.125, 2.875]], jnp.float32)

        # ---------- derived sizes ----------
        h0 = self.imgsz
        h1 = h0 // 2
        h2 = h1 // 2
        self.ny = self.nx = h2
        r1 = h1 * h1
        hw_out = h2 * h2
        r1_pad = ((r1 + LANE - 1) // LANE) * LANE
        assert 9 * c0 <= LANE and 9 * c1 <= LANE and self.na * self.no <= LANE
        assert r1 % 8 == 0 and hw_out % 8 == 0 and (9 * r1) % 8 == 0 and (9 * hw_out) % 8 == 0
        assert (h0 * h0) % LANE == 0

        # ---------- MXU/lane-friendly VMEM-resident constants ----------
        p1 = _conv_selectors(h0, h0, h1, h1, 3, 2, 1).astype(jnp.bfloat16)   # (9*r1, h0^2)
        p2 = _conv_selectors(h1, h1, h2, h2, 3, 2, 1)                        # (9*hw, r1)
        p2 = jnp.pad(p2, ((0, 0), (0, r1_pad - r1))).astype(jnp.bfloat16)    # full-lane K

        w1p = _pack_conv_weight(self.w1)     # (128, 128) dense im2col weights
        w2p = _pack_conv_weight(self.w2)
        b1r = _bias_row(self.b1)             # (1, 128) f32
        b2r = _bias_row(self.b2)

        # Head: all na*no channels in one lane group, column = a*no + c.
        w3m = jnp.pad(self.w3.reshape(self.na * self.no, c2).T,
                      ((0, LANE - c2), (0, LANE - self.na * self.no))).astype(jnp.bfloat16)
        b3r = jnp.pad(self.b3, (0, LANE - self.na * self.no)
                      ).reshape(1, LANE).astype(jnp.float32)

        # Fused YOLOv5 decode constants: y = A*s + B + C*s^2  (s = sigmoid(raw))
        #   xy: (2*s + g - 0.5)*stride   -> A=2*stride, B=(g-0.5)*stride
        #   wh: (2*s)^2 * anchor*stride  -> C=4*anchor*stride
        #   obj/cls: s                   -> A=1
        pos = jnp.arange(hw_out)
        gx = (pos % self.nx).astype(jnp.float32)
        gy = (pos // self.nx).astype(jnp.float32)
        sf = float(self.stride)
        adec = jnp.zeros((hw_out, LANE), jnp.float32)
        bdec = jnp.zeros((hw_out, LANE), jnp.float32)
        cdec = jnp.zeros((hw_out, LANE), jnp.float32)
        for a in range(self.na):
            o = a * self.no
            adec = adec.at[:, o + 0].set(2.0 * sf).at[:, o + 1].set(2.0 * sf)
            adec = adec.at[:, o + 4:o + self.no].set(1.0)
            bdec = bdec.at[:, o + 0].set((gx - 0.5) * sf).at[:, o + 1].set((gy - 0.5) * sf)
            cdec = cdec.at[:, o + 2].set(4.0 * sf * self.anchors[a, 0])
            cdec = cdec.at[:, o + 3].set(4.0 * sf * self.anchors[a, 1])

        self._consts = (p1, w1p, b1r, p2, w2p, b2r, w3m, b3r, adec, bdec, cdec)
        out_dtype = jnp.bfloat16 if self.fp16 else jnp.float32
        self._fwd = jax.jit(functools.partial(
            _forward_impl, na=self.na, no=self.no, hw_out=hw_out,
            r1=r1, r1_pad=r1_pad, c1=c1, taps=9, out_dtype=out_dtype))

    def forward(self, im, augment=False, visualize=False):
        bsz, ch, h, w = im.shape
        assert ch == 3 and h == self.imgsz and w == self.imgsz
        y = self._fwd(im, self._consts)        # (B, na*ny*nx, no); bf16 if fp16 else f32
        # original: isinstance(y, (list, tuple)) and len == 1 -> return y[0]
        return y

    __call__ = forward

    def warmup(self, imgsz=(1, 3, 16, 16)):
        self.forward(jnp.zeros(imgsz, jnp.float32))


# ----------------------------------------------------------------------------
# Pure-JAX reference (for correctness check only)
# ----------------------------------------------------------------------------
def _reference_forward(im, model):
    def conv(x, w, b, stride, pad):
        y = jax.lax.conv_general_dilated(
            x, w, window_strides=(stride, stride), padding=((pad, pad), (pad, pad)),
            dimension_numbers=("NCHW", "OIHW", "NCHW"),
            precision=jax.lax.Precision.HIGHEST)
        return y + b.reshape(1, -1, 1, 1)

    silu = lambda v: v * jax.nn.sigmoid(v)
    x = silu(conv(im.astype(jnp.float32), model.w1, model.b1, 2, 1))
    x = silu(conv(x, model.w2, model.b2, 2, 1))
    p = jax.nn.sigmoid(conv(x, model.w3, model.b3, 1, 0))
    bsz, _, ny, nx = p.shape
    p = p.reshape(bsz, model.na, model.no, ny, nx).transpose(0, 1, 3, 4, 2)
    gy, gx = jnp.meshgrid(jnp.arange(ny), jnp.arange(nx), indexing="ij")
    grid = jnp.stack([gx, gy], -1).astype(jnp.float32)
    anchor_grid = (model.anchors * model.stride).reshape(model.na, 1, 1, 2)
    xy = (p[..., 0:2] * 2.0 + grid - 0.5) * model.stride
    wh = (p[..., 2:4] * 2.0) ** 2 * anchor_grid
    y = jnp.concatenate([xy, wh, p[..., 4:]], -1)
    return y.reshape(bsz, model.na * ny * nx, model.no)


if __name__ == "__main__":
    model = DetectMultiBackendPallas(fp16=False, seed=0, imgsz=16)
    key = jax.random.PRNGKey(0)
    im = jax.random.normal(key, (2, 3, 16, 16), dtype=jnp.float32)   # NCHW input

    y = model(im)
    jax.block_until_ready(y)

    assert y.shape == (2, model.na * model.ny * model.nx, model.no), y.shape
    assert bool(jnp.all(jnp.isfinite(y)))
    y_ref = _reference_forward(im, model)
    assert bool(jnp.allclose(y, y_ref, atol=1e-1, rtol=1e-1)), \
        float(jnp.max(jnp.abs(y - y_ref)))
    print("KERNEL_OK")
</pallas_src>

<mosaic_0001>
module attributes {stable_mosaic.version = 11 : i64} {
  func.func @_fused_detect_kernel(%arg0: i32, %arg1: memref<1x256x3xbf16, #tpu.memory_space<vmem>>, %arg2: memref<576x256xbf16, #tpu.memory_space<vmem>>, %arg3: memref<128x128xbf16, #tpu.memory_space<vmem>>, %arg4: memref<1x128xf32, #tpu.memory_space<vmem>>, %arg5: memref<144x128xbf16, #tpu.memory_space<vmem>>, %arg6: memref<128x128xbf16, #tpu.memory_space<vmem>>, %arg7: memref<1x128xf32, #tpu.memory_space<vmem>>, %arg8: memref<128x128xbf16, #tpu.memory_space<vmem>>, %arg9: memref<1x128xf32, #tpu.memory_space<vmem>>, %arg10: memref<16x128xf32, #tpu.memory_space<vmem>>, %arg11: memref<16x128xf32, #tpu.memory_space<vmem>>, %arg12: memref<16x128xf32, #tpu.memory_space<vmem>>, %arg13: memref<1x16x128xf32, #tpu.memory_space<vmem>>) attributes {dimension_semantics = [#tpu.dimension_semantics<parallel>], iteration_bounds = array<i64: 2>, scalar_prefetch = 0 : i64, scratch_operands = 0 : i64, tpu.core_type = #tpu.core_type<tc>, window_params = [{transform_indices = @transform_0, window_bounds = array<i64: 1, 256, 3>}, {pipeline_mode = #tpu.pipeline_mode<synchronous>, transform_indices = @transform_1, window_bounds = array<i64: 576, 256>}, {pipeline_mode = #tpu.pipeline_mode<synchronous>, transform_indices = @transform_2, window_bounds = array<i64: 128, 128>}, {pipeline_mode = #tpu.pipeline_mode<synchronous>, transform_indices = @transform_3, window_bounds = array<i64: 1, 128>}, {pipeline_mode = #tpu.pipeline_mode<synchronous>, transform_indices = @transform_4, window_bounds = array<i64: 144, 128>}, {pipeline_mode = #tpu.pipeline_mode<synchronous>, transform_indices = @transform_5, window_bounds = array<i64: 128, 128>}, {pipeline_mode = #tpu.pipeline_mode<synchronous>, transform_indices = @transform_6, window_bounds = array<i64: 1, 128>}, {pipeline_mode = #tpu.pipeline_mode<synchronous>, transform_indices = @transform_7, window_bounds = array<i64: 128, 128>}, {pipeline_mode = #tpu.pipeline_mode<synchronous>, transform_indices = @transform_8, window_bounds = array<i64: 1, 128>}, {pipeline_mode = #tpu.pipeline_mode<synchronous>, transform_indices = @transform_9, window_bounds = array<i64: 16, 128>}, {pipeline_mode = #tpu.pipeline_mode<synchronous>, transform_indices = @transform_10, window_bounds = array<i64: 16, 128>}, {pipeline_mode = #tpu.pipeline_mode<synchronous>, transform_indices = @transform_11, window_bounds = array<i64: 16, 128>}, {transform_indices = @transform_12, window_bounds = array<i64: 1, 16, 128>}]} {
    %c0 = arith.constant 0 : index
    %c0_0 = arith.constant 0 : index
    %c0_1 = arith.constant 0 : index
    %0 = vector.load %arg1[%c0, %c0_0, %c0_1] : memref<1x256x3xbf16, #tpu.memory_space<vmem>>, vector<1x256x3xbf16>
    %1 = vector.shape_cast %0 : vector<1x256x3xbf16> to vector<256x3xbf16>
    %c0_2 = arith.constant 0 : index
    %c0_3 = arith.constant 0 : index
    %2 = vector.load %arg2[%c0_2, %c0_3] : memref<576x256xbf16, #tpu.memory_space<vmem>>, vector<576x256xbf16>
    %cst = arith.constant dense<0.000000e+00> : vector<576x3xf32>
    %3 = tpu.matmul %2, %1, %cst {dimension_numbers = #tpu.dot_dimension_numbers<[1], [0], [0], [1], [0, 0, 1, 1], [], []>} : vector<576x256xbf16>, vector<256x3xbf16>, vector<576x3xf32> -> vector<576x3xf32>
    %4 = vector.extract_strided_slice %3 {offsets = [0, 0], sizes = [64, 3], strides = [1, 1]} : vector<576x3xf32> to vector<64x3xf32>
    %5 = vector.extract_strided_slice %3 {offsets = [64, 0], sizes = [64, 3], strides = [1, 1]} : vector<576x3xf32> to vector<64x3xf32>
    %6 = vector.extract_strided_slice %3 {offsets = [128, 0], sizes = [64, 3], strides = [1, 1]} : vector<576x3xf32> to vector<64x3xf32>
    %7 = vector.extract_strided_slice %3 {offsets = [192, 0], sizes = [64, 3], strides = [1, 1]} : vector<576x3xf32> to vector<64x3xf32>
    %8 = vector.extract_strided_slice %3 {offsets = [256, 0], sizes = [64, 3], strides = [1, 1]} : vector<576x3xf32> to vector<64x3xf32>
    %9 = vector.extract_strided_slice %3 {offsets = [320, 0], sizes = [64, 3], strides = [1, 1]} : vector<576x3xf32> to vector<64x3xf32>
    %10 = vector.extract_strided_slice %3 {offsets = [384, 0], sizes = [64, 3], strides = [1, 1]} : vector<576x3xf32> to vector<64x3xf32>
    %11 = vector.extract_strided_slice %3 {offsets = [448, 0], sizes = [64, 3], strides = [1, 1]} : vector<576x3xf32> to vector<64x3xf32>
    %12 = vector.extract_strided_slice %3 {offsets = [512, 0], sizes = [64, 3], strides = [1, 1]} : vector<576x3xf32> to vector<64x3xf32>
    %cst_4 = arith.constant 0.000000e+00 : f32
    %13 = vector.broadcast %cst_4 : f32 to vector<64x101xf32>
    %14 = tpu.concatenate %4, %5, %6, %7, %8, %9, %10, %11, %12, %13 in 1 : vector<64x3xf32>, vector<64x3xf32>, vector<64x3xf32>, vector<64x3xf32>, vector<64x3xf32>, vector<64x3xf32>, vector<64x3xf32>, vector<64x3xf32>, vector<64x3xf32>, vector<64x101xf32> -> vector<64x128xf32>
    %15 = arith.truncf %14 : vector<64x128xf32> to vector<64x128xbf16>
    %c0_5 = arith.constant 0 : index
    %c0_6 = arith.constant 0 : index
    %16 = vector.load %arg3[%c0_5, %c0_6] : memref<128x128xbf16, #tpu.memory_space<vmem>>, vector<128x128xbf16>
    %cst_7 = arith.constant dense<0.000000e+00> : vector<64x128xf32>
    %17 = tpu.matmul %15, %16, %cst_7 {dimension_numbers = #tpu.dot_dimension_numbers<[1], [0], [0], [1], [0, 0, 1, 1], [], []>} : vector<64x128xbf16>, vector<128x128xbf16>, vector<64x128xf32> -> vector<64x128xf32>
    %c0_8 = arith.constant 0 : index
    %c0_9 = arith.constant 0 : index
    %18 = vector.load %arg4[%c0_8, %c0_9] : memref<1x128xf32, #tpu.memory_space<vmem>>, vector<1x128xf32>
    %19 = vector.broadcast %18 : vector<1x128xf32> to vector<64x128xf32>
    %20 = arith.addf %17, %19 : vector<64x128xf32>
    %cst_10 = arith.constant 5.000000e-01 : f32
    %21 = vector.broadcast %cst_10 : f32 to vector<64x128xf32>
    %22 = arith.mulf %21, %20 : vector<64x128xf32>
    %23 = math.tanh %22 : vector<64x128xf32>
    %cst_11 = arith.constant 1.000000e+00 : f32
    %24 = vector.broadcast %cst_11 : f32 to vector<64x128xf32>
    %25 = arith.addf %23, %24 : vector<64x128xf32>
    %cst_12 = arith.constant 5.000000e-01 : f32
    %26 = vector.broadcast %cst_12 : f32 to vector<64x128xf32>
    %27 = arith.mulf %26, %25 : vector<64x128xf32>
    %28 = arith.mulf %20, %27 : vector<64x128xf32>
    %29 = arith.truncf %28 : vector<64x128xf32> to vector<64x128xbf16>
    %cst_13 = arith.constant 0.000000e+00 : bf16
    %30 = vector.broadcast %cst_13 : bf16 to vector<64x128xbf16>
    %31 = tpu.concatenate %29, %30 in 0 : vector<64x128xbf16>, vector<64x128xbf16> -> vector<128x128xbf16>
    %c0_14 = arith.constant 0 : index
    %c0_15 = arith.constant 0 : index
    %32 = vector.load %arg5[%c0_14, %c0_15] : memref<144x128xbf16, #tpu.memory_space<vmem>>, vector<144x128xbf16>
    %cst_16 = arith.constant dense<0.000000e+00> : vector<144x128xf32>
    %33 = tpu.matmul %32, %31, %cst_16 {dimension_numbers = #tpu.dot_dimension_numbers<[1], [0], [0], [1], [0, 0, 1, 1], [], []>} : vector<144x128xbf16>, vector<128x128xbf16>, vector<144x128xf32> -> vector<144x128xf32>
    %34 = vector.extract_strided_slice %33 {offsets = [0, 0], sizes = [16, 8], strides = [1, 1]} : vector<144x128xf32> to vector<16x8xf32>
    %35 = vector.extract_strided_slice %33 {offsets = [16, 0], sizes = [16, 8], strides = [1, 1]} : vector<144x128xf32> to vector<16x8xf32>
    %36 = vector.extract_strided_slice %33 {offsets = [32, 0], sizes = [16, 8], strides = [1, 1]} : vector<144x128xf32> to vector<16x8xf32>
    %37 = vector.extract_strided_slice %33 {offsets = [48, 0], sizes = [16, 8], strides = [1, 1]} : vector<144x128xf32> to vector<16x8xf32>
    %38 = vector.extract_strided_slice %33 {offsets = [64, 0], sizes = [16, 8], strides = [1, 1]} : vector<144x128xf32> to vector<16x8xf32>
    %39 = vector.extract_strided_slice %33 {offsets = [80, 0], sizes = [16, 8], strides = [1, 1]} : vector<144x128xf32> to vector<16x8xf32>
    %40 = vector.extract_strided_slice %33 {offsets = [96, 0], sizes = [16, 8], strides = [1, 1]} : vector<144x128xf32> to vector<16x8xf32>
    %41 = vector.extract_strided_slice %33 {offsets = [112, 0], sizes = [16, 8], strides = [1, 1]} : vector<144x128xf32> to vector<16x8xf32>
    %42 = vector.extract_strided_slice %33 {offsets = [128, 0], sizes = [16, 8], strides = [1, 1]} : vector<144x128xf32> to vector<16x8xf32>
    %cst_17 = arith.constant 0.000000e+00 : f32
    %43 = vector.broadcast %cst_17 : f32 to vector<16x56xf32>
    %44 = tpu.concatenate %34, %35, %36, %37, %38, %39, %40, %41, %42, %43 in 1 : vector<16x8xf32>, vector<16x8xf32>, vector<16x8xf32>, vector<16x8xf32>, vector<16x8xf32>, vector<16x8xf32>, vector<16x8xf32>, vector<16x8xf32>, vector<16x8xf32>, vector<16x56xf32> -> vector<16x128xf32>
    %45 = arith.truncf %44 : vector<16x128xf32> to vector<16x128xbf16>
    %c0_18 = arith.constant 0 : index
    %c0_19 = arith.constant 0 : index
    %46 = vector.load %arg6[%c0_18, %c0_19] : memref<128x128xbf16, #tpu.memory_space<vmem>>, vector<128x128xbf16>
    %cst_20 = arith.constant dense<0.000000e+00> : vector<16x128xf32>
    %47 = tpu.matmul %45, %46, %cst_20 {dimension_numbers = #tpu.dot_dimension_numbers<[1], [0], [0], [1], [0, 0, 1, 1], [], []>} : vector<16x128xbf16>, vector<128x128xbf16>, vector<16x128xf32> -> vector<16x128xf32>
    %c0_21 = arith.constant 0 : index
    %c0_22 = arith.constant 0 : index
    %48 = vector.load %arg7[%c0_21, %c0_22] : memref<1x128xf32, #tpu.memory_space<vmem>>, vector<1x128xf32>
    %49 = vector.broadcast %48 : vector<1x128xf32> to vector<16x128xf32>
    %50 = arith.addf %47, %49 : vector<16x128xf32>
    %cst_23 = arith.constant 5.000000e-01 : f32
    %51 = vector.broadcast %cst_23 : f32 to vector<16x128xf32>
    %52 = arith.mulf %51, %50 : vector<16x128xf32>
    %53 = math.tanh %52 : vector<16x128xf32>
    %cst_24 = arith.constant 1.000000e+00 : f32
    %54 = vector.broadcast %cst_24 : f32 to vector<16x128xf32>
    %55 = arith.addf %53, %54 : vector<16x128xf32>
    %cst_25 = arith.constant 5.000000e-01 : f32
    %56 = vector.broadcast %cst_25 : f32 to vector<16x128xf32>
    %57 = arith.mulf %56, %55 : vector<16x128xf32>
    %58 = arith.mulf %50, %57 : vector<16x128xf32>
    %59 = arith.truncf %58 : vector<16x128xf32> to vector<16x128xbf16>
    %c0_26 = arith.constant 0 : index
    %c0_27 = arith.constant 0 : index
    %60 = vector.load %arg8[%c0_26, %c0_27] : memref<128x128xbf16, #tpu.memory_space<vmem>>, vector<128x128xbf16>
    %cst_28 = arith.constant dense<0.000000e+00> : vector<16x128xf32>
    %61 = tpu.matmul %59, %60, %cst_28 {dimension_numbers = #tpu.dot_dimension_numbers<[1], [0], [0], [1], [0, 0, 1, 1], [], []>} : vector<16x128xbf16>, vector<128x128xbf16>, vector<16x128xf32> -> vector<16x128xf32>
    %c0_29 = arith.constant 0 : index
    %c0_30 = arith.constant 0 : index
    %62 = vector.load %arg9[%c0_29, %c0_30] : memref<1x128xf32, #tpu.memory_space<vmem>>, vector<1x128xf32>
    %63 = vector.broadcast %62 : vector<1x128xf32> to vector<16x128xf32>
    %64 = arith.addf %61, %63 : vector<16x128xf32>
    %cst_31 = arith.constant 5.000000e-01 : f32
    %65 = vector.broadcast %cst_31 : f32 to vector<16x128xf32>
    %66 = arith.mulf %65, %64 : vector<16x128xf32>
    %67 = math.tanh %66 : vector<16x128xf32>
    %cst_32 = arith.constant 1.000000e+00 : f32
    %68 = vector.broadcast %cst_32 : f32 to vector<16x128xf32>
    %69 = arith.addf %67, %68 : vector<16x128xf32>
    %cst_33 = arith.constant 5.000000e-01 : f32
    %70 = vector.broadcast %cst_33 : f32 to vector<16x128xf32>
    %71 = arith.mulf %70, %69 : vector<16x128xf32>
    %c0_34 = arith.constant 0 : index
    %c0_35 = arith.constant 0 : index
    %72 = vector.load %arg10[%c0_34, %c0_35] : memref<16x128xf32, #tpu.memory_space<vmem>>, vector<16x128xf32>
    %73 = arith.mulf %72, %71 : vector<16x128xf32>
    %c0_36 = arith.constant 0 : index
    %c0_37 = arith.constant 0 : index
    %74 = vector.load %arg11[%c0_36, %c0_37] : memref<16x128xf32, #tpu.memory_space<vmem>>, vector<16x128xf32>
    %75 = arith.addf %73, %74 : vector<16x128xf32>
    %c0_38 = arith.constant 0 : index
    %c0_39 = arith.constant 0 : index
    %76 = vector.load %arg12[%c0_38, %c0_39] : memref<16x128xf32, #tpu.memory_space<vmem>>, vector<16x128xf32>
    %77 = arith.mulf %71, %71 : vector<16x128xf32>
    %78 = arith.mulf %76, %77 : vector<16x128xf32>
    %79 = arith.addf %75, %78 : vector<16x128xf32>
    %c0_40 = arith.constant 0 : index
    %c0_41 = arith.constant 0 : index
    %c0_42 = arith.constant 0 : index
    %80 = vector.load %arg13[%c0_40, %c0_41, %c0_42] : memref<1x16x128xf32, #tpu.memory_space<vmem>>, vector<1x16x128xf32>
    %81 = vector.shape_cast %80 : vector<1x16x128xf32> to vector<16x128xf32>
    %82 = vector.shape_cast %79 : vector<16x128xf32> to vector<1x16x128xf32>
    tpu.vector_store %arg13[%c0_40, %c0_41, %c0_42], %82 {strides = array<i32>} : memref<1x16x128xf32, #tpu.memory_space<vmem>>, vector<1x16x128xf32>,
    return
  }
  func.func @transform_0(%arg0: i32) -> (i32, i32, i32) {
    %c0_i32 = arith.constant 0 : i32
    %c0_i32_0 = arith.constant 0 : i32
    %c0_i32_1 = arith.constant 0 : i32
    return %arg0, %c0_i32, %c0_i32_0 : i32, i32, i32
  }
  func.func @transform_1(%arg0: i32) -> (i32, i32) {
    %c0_i32 = arith.constant 0 : i32
    %c0_i32_0 = arith.constant 0 : i32
    %c0_i32_1 = arith.constant 0 : i32
    return %c0_i32, %c0_i32_0 : i32, i32
  }
  func.func @transform_2(%arg0: i32) -> (i32, i32) {
    %c0_i32 = arith.constant 0 : i32
    %c0_i32_0 = arith.constant 0 : i32
    %c0_i32_1 = arith.constant 0 : i32
    return %c0_i32, %c0_i32_0 : i32, i32
  }
  func.func @transform_3(%arg0: i32) -> (i32, i32) {
    %c0_i32 = arith.constant 0 : i32
    %c0_i32_0 = arith.constant 0 : i32
    %c0_i32_1 = arith.constant 0 : i32
    return %c0_i32, %c0_i32_0 : i32, i32
  }
  func.func @transform_4(%arg0: i32) -> (i32, i32) {
    %c0_i32 = arith.constant 0 : i32
    %c0_i32_0 = arith.constant 0 : i32
    %c0_i32_1 = arith.constant 0 : i32
    return %c0_i32, %c0_i32_0 : i32, i32
  }
  func.func @transform_5(%arg0: i32) -> (i32, i32) {
    %c0_i32 = arith.constant 0 : i32
    %c0_i32_0 = arith.constant 0 : i32
    %c0_i32_1 = arith.constant 0 : i32
    return %c0_i32, %c0_i32_0 : i32, i32
  }
  func.func @transform_6(%arg0: i32) -> (i32, i32) {
    %c0_i32 = arith.constant 0 : i32
    %c0_i32_0 = arith.constant 0 : i32
    %c0_i32_1 = arith.constant 0 : i32
    return %c0_i32, %c0_i32_0 : i32, i32
  }
  func.func @transform_7(%arg0: i32) -> (i32, i32) {
    %c0_i32 = arith.constant 0 : i32
    %c0_i32_0 = arith.constant 0 : i32
    %c0_i32_1 = arith.constant 0 : i32
    return %c0_i32, %c0_i32_0 : i32, i32
  }
  func.func @transform_8(%arg0: i32) -> (i32, i32) {
    %c0_i32 = arith.constant 0 : i32
    %c0_i32_0 = arith.constant 0 : i32
    %c0_i32_1 = arith.constant 0 : i32
    return %c0_i32, %c0_i32_0 : i32, i32
  }
  func.func @transform_9(%arg0: i32) -> (i32, i32) {
    %c0_i32 = arith.constant 0 : i32
    %c0_i32_0 = arith.constant 0 : i32
    %c0_i32_1 = arith.constant 0 : i32
    return %c0_i32, %c0_i32_0 : i32, i32
  }
  func.func @transform_10(%arg0: i32) -> (i32, i32) {
    %c0_i32 = arith.constant 0 : i32
    %c0_i32_0 = arith.constant 0 : i32
    %c0_i32_1 = arith.constant 0 : i32
    return %c0_i32, %c0_i32_0 : i32, i32
  }
  func.func @transform_11(%arg0: i32) -> (i32, i32) {
    %c0_i32 = arith.constant 0 : i32
    %c0_i32_0 = arith.constant 0 : i32
    %c0_i32_1 = arith.constant 0 : i32
    return %c0_i32, %c0_i32_0 : i32, i32
  }
  func.func @transform_12(%arg0: i32) -> (i32, i32, i32) {
    %c0_i32 = arith.constant 0 : i32
    %c0_i32_0 = arith.constant 0 : i32
    %c0_i32_1 = arith.constant 0 : i32
    return %arg0, %c0_i32, %c0_i32_0 : i32, i32, i32
  }
}

</mosaic_0001>

<bundles_post_ra>
// kernel: _forward_impl.1
= control target key start
LH: loop header
LB: loop body
LE: loop exit
PB: predicated region body
PF: predicated region fallthrough
CT: control target
= control target key end

     0   :  { %17 = vsyncpa [#allocation3], 0  ;;  %s3311_s21 = smov 0   ;;  %s3861_s0 = inlined_call_operand.vmem [shape: bf16[2,256,3], index: 0, kind: input, shape index: {}]   ;;  %s3862_s1 = inlined_call_operand.hbm [shape: bf16[576,256], index: 1, kind: input, shape index: {}]   ;;  %s3863_s2 = inlined_call_operand.vmem [shape: bf16[128,128], index: 2, kind: input, shape index: {}]   ;;  %s3864_s3 = inlined_call_operand.vmem [shape: f32[1,128], index: 3, kind: input, shape index: {}]   ;;  %s3865_s4 = inlined_call_operand.vmem [shape: bf16[144,128], index: 4, kind: input, shape index: {}]   ;;  %s3866_s5 = inlined_call_operand.vmem [shape: bf16[128,128], index: 5, kind: input, shape index: {}]   ;;  %s3867_s6 = inlined_call_operand.vmem [shape: f32[1,128], index: 6, kind: input, shape index: {}]   ;;  %s3868_s7 = inlined_call_operand.vmem [shape: bf16[128,128], index: 7, kind: input, shape index: {}]   ;;  %s3869_s8 = inlined_call_operand.vmem [shape: f32[1,128], index: 8, kind: input, shape index: {}]   ;;  %s3870_s9 = inlined_call_operand.vmem [shape: f32[16,128], index: 9, kind: input, shape index: {}]   ;;  %s3871_s10 = inlined_call_operand.vmem [shape: f32[16,128], index: 10, kind: input, shape index: {}]   ;;  %s3872_s11 = inlined_call_operand.vmem [shape: f32[16,128], index: 11, kind: input, shape index: {}]   ;;  %s3873_s12 = inlined_call_operand.vmem [shape: f32[2,16,128], index: 12, kind: output, shape index: {}]  }
   0x1 LB: > { %s3317_s22 = sadd.s32 4294967295, %s3223_s21   ;;  %p2430_p0 = scmp.ge.s32.totalorder %s3223_s21, 1  ;;  %s3223_s21 = sphi %s3311_s21, %s23_s21  }
   0x2   : > { %p311_p1 = scmp.lt.s32.totalorder %s3223_s21, 3  ;;  %s3225_s23 = smov [#allocation2]  }
   0x3   : > { %s323_s24 = sshll.u32 %s3225_s23, 4  ;;  %p3874_p3 = scmp.eq.s32.totalorder %s3317_s22, 0  ;;  %s324_s24 = int_to_ptr.vmem [resolvable:$true] %s323_s24 }
   0x4   : > { %p3321_p2 = pnand %p2430_p0, %p311_p1  ;;  %s3185_s29 = scalar_lea.hbm %s3862_s1, 9216 }
   0x5   : > { %p3186_p6 = scmp.ne.s32.totalorder %s3862_s1, %s3185_s29  ;;  %p3192_p10 = scmp.lt.u32.totalorder %s3185_s29, %s3862_s1 }
   0x6   : > { %s3876_s25 = scalar_select %p3321_p2, 1, 0 }
   0x7   : > { %p2769_p4 = pneg %p3321_p2 }
   0x9   : > { %p3330_p5 = pnand %p3874_p3, %p2769_p4 }
   0xb   : > { %p3187_p7 = pneg %p3330_p5 }
   0xd   : > { %p3188_p8 = pnand %p3187_p7, %p3186_p6 }
   0xf   : > { %p3189_p9 = pneg %p3188_p8 }
  0x11   : > { %p3194_p11 = pnand %p3192_p10, %p3189_p9 }
  0x13   : > { %3197 = shalt.err (!%p3194_p11)
}
  0x14   : > { %s3198_s16 = scalar_lea.vmem %s324_s24, 9216  ;;  %p3206_p1 = scmp.lt.s32.totalorder %s324_s24, %s324_s24 }
  0x15   : > { %p3199_p12 = scmp.ne.s32.totalorder %s324_s24, %s3198_s16  ;;  %p3207_p4 = scmp.lt.s32.totalorder %s3198_s16, %s3198_s16 }
  0x17   : > { %p3201_p13 = pnand %p3199_p12, %p3187_p7  ;;  %p3208_p3 = por %p3207_p4, %p3206_p1 }
  0x19   : > { %p3202_p0 = pneg %p3201_p13 }
  0x1b   : > { %p3209_p2 = pnand %p3208_p3, %p3202_p0 }
  0x1d   : > { %3212 = shalt.err (!%p3209_p2)
}
  0x1e   : > { %s3226_s17 = smov 128   ;;  %s3227_s18 = smov 8  }
  0x1f   : > { %2772 = dma.hbm_to_vmem [thread:$0]  (!%p3330_p5), %s3862_s1, 9216, %s324_s24, [#allocation3], %s3226_s17, %s3226_s17, %s3227_s18  }
  0x20   : > { %p3878_p6 = scmp.ne.s32.totalorder %s3876_s25, 0 }
  0x21   : > { %p3879_p8 = scmp.eq.s32.totalorder (!%p3878_p6), %s3317_s22, 0 }
  0x22   : > { %377 = sbr.rel (%p3878_p6) target bundleno = 1781 (0x6f5), region = 68 }
  0x29   : > { %3218 = dma.done.wait (%p3879_p8), [#allocation3], 9216   ;;  %p3880_p7 = pmov %p3879_p8 }
  0x2a   : > { %p419_p2 = scmp.lt.s32.totalorder %s3317_s22, 1  ;;  %v3228_v0 = vmov 0   ;;  %v3022_v6 = vld [vmem:[#allocation2 + $0x4] ss:$8 sps:$4 sm:$0xff]   ;;  %v3020_v19 = vld [vmem:[#allocation2] ss:$8 sps:$4 sm:$0xff]  }
  0x2b   : > { %3220 = vsyncadd (%p3880_p7), [#allocation3], 4294958080  ;;  %990 = vmatprep.subr.bf16.mxu0 %v3228_v0  ;;  %2733 = vmatprep.subr.bf16.mxu1 %v3228_v0  ;;  %v3028_v8 = vld [vmem:[#allocation2 + $0x1a4] ss:$8 sps:$4 sm:$0xff]   ;;  %v3026_v20 = vld [vmem:[#allocation2 + $0x1a0] ss:$8 sps:$4 sm:$0xff]  }
  0x2c   : > { %s3884_s22 = smov (!%p419_p2, %s3317_s22), 1  ;;  %1022 = vmatprep.mubr.bf16.mxu0 %v3022_v6  ;;  %1230 = vmatprep.mubr.bf16.mxu1 %v3028_v8  ;;  %v3023_v21 = vld [vmem:[#allocation2 + $0x14] ss:$8 sps:$4 sm:$0xff]   ;;  %v3025_v23 = vld [vmem:[#allocation2 + $0x10] ss:$8 sps:$4 sm:$0xff]   ;;  %s3229_s27 = smov 21  }
  0x2d   : > { %s2580_s23 = sshll.u32 %s3884_s22, 7  ;;  %v3032_v22 = vld [vmem:[#allocation2 + $0x1b4] ss:$8 sps:$4 sm:$0xff]   ;;  %v3034_v24 = vld [vmem:[#allocation2 + $0x1b0] ss:$8 sps:$4 sm:$0xff]   ;;  %s3230_s28 = smov 3  }
  0x2e   : > { %s3366_s26 = scalar_lea.vmem %s3861_s0, %s2580_s23  ;;  %v3029_v25 = vld [vmem:[#allocation2 + $0x24] ss:$8 sps:$4 sm:$0xff]   ;;  %v3031_v27 = vld [vmem:[#allocation2 + $0x20] ss:$8 sps:$4 sm:$0xff]   ;;  %v3035_v29 = vld [vmem:[#allocation2 + $0x34] ss:$8 sps:$4 sm:$0xff]  }
  0x2f   : > { %v3004_v1 = vld [vmem:[%s3366_s26] sm:$0xff]   ;;  %v3005_v2 = vld [vmem:[%s3366_s26 + $0x8] sm:$0xff]   ;;  %v3006_v3 = vld [vmem:[%s3366_s26 + $0x10] sm:$0xff]   ;;  %s3231_s29 = smov 24   ;;  %s3232_s30 = smov 6   ;;  %vm1567_vm0 = vcmask 23552  }
  0x30   : > { %991 = vmatpush1.bf16.msra.mxu0 %v3004_v1  ;;  %2749 = vmatpush1.bf16.msra.mxu1 %v3004_v1  ;;  %v3007_v4 = vld [vmem:[%s3366_s26 + $0x18] sm:$0xff]   ;;  %v3008_v5 = vld [vmem:[%s3366_s26 + $0x20] sm:$0xff]   ;;  %v3009_v7 = vld [vmem:[%s3366_s26 + $0x28] sm:$0xff]   ;;  %s3233_s13 = smov 9   ;;  %s3234_s18 = smov 12   ;;  %vm1576_vm1 = vcmask 48128  }
  0x31   : > { %992 = vmatprep.subr.bf16.mxu0 %v3228_v0  ;;  %2734 = vmatprep.subr.bf16.mxu1 %v3228_v0  ;;  %v3010_v9 = vld [vmem:[%s3366_s26 + $0x30] sm:$0xff]   ;;  %v3011_v10 = vld [vmem:[%s3366_s26 + $0x38] sm:$0xff]   ;;  %v3012_v11 = vld [vmem:[%s3366_s26 + $0x40] sm:$0xff]   ;;  %vm1585_vm2 = vcmask 72704   ;;  %vm1594_vm3 = vcmask 97280   ;;  %vm1603_vm4 = vcmask 121856  }
  0x32   : > { %v3013_v12 = vld [vmem:[%s3366_s26 + $0x48] sm:$0xff]   ;;  %v3014_v13 = vld [vmem:[%s3366_s26 + $0x50] sm:$0xff]   ;;  %v3015_v14 = vld [vmem:[%s3366_s26 + $0x58] sm:$0xff]   ;;  %vm1612_vm5 = vcmask 146432   ;;  %vm1621_vm6 = vcmask 171008   ;;  %vm1630_vm7 = vcmask 195584  }
  0x33   : > { %v3016_v15 = vld [vmem:[%s3366_s26 + $0x60] sm:$0xff]   ;;  %v3017_v16 = vld [vmem:[%s3366_s26 + $0x68] sm:$0xff]   ;;  %v3018_v17 = vld [vmem:[%s3366_s26 + $0x70] sm:$0xff]   ;;  %vm1639_vm8 = vcmask 220160   ;;  %vm3238_vm10 = vmmov 0   ;;  %s3239_s15 = smov 8  }
  0x34   : > { %993 = vmatpush1.bf16.msra.mxu0 %v3005_v2  ;;  %2750 = vmatpush1.bf16.msra.mxu1 %v3005_v2  ;;  %v3019_v18 = vld [vmem:[%s3366_s26 + $0x78] sm:$0xff]   ;;  %v3038_v26 = vld [vmem:[#allocation2 + $0x1c4] ss:$8 sps:$4 sm:$0xff]   ;;  %v3040_v28 = vld [vmem:[#allocation2 + $0x1c0] ss:$8 sps:$4 sm:$0xff]   ;;  %s3241_s24 = smov 32  }
  0x35   : > { %994 = vmatprep.subr.bf16.mxu0 %v3228_v0  ;;  %2735 = vmatprep.subr.bf16.mxu1 %v3228_v0  ;;  %v3047_v30 = vld [vmem:[#allocation2 + $0x1d4] ss:$8 sps:$4 sm:$0xff]   ;;  %v3037_v31 = vld [vmem:[#allocation2 + $0x30] ss:$8 sps:$4 sm:$0xff]   ;;  %v3041_v33 = vld [vmem:[#allocation2 + $0x44] ss:$8 sps:$4 sm:$0xff]  }
  0x36   : > { %v3049_v32 = vld [vmem:[#allocation2 + $0x1d0] ss:$8 sps:$4 sm:$0xff]   ;;  %v3053_v34 = vld [vmem:[#allocation2 + $0x1e4] ss:$8 sps:$4 sm:$0xff]   ;;  %v3043_v35 = vld [vmem:[#allocation2 + $0x40] ss:$8 sps:$4 sm:$0xff]  }
  0x37   : > { %v3055_v36 = vld [vmem:[#allocation2 + $0x1e0] ss:$8 sps:$4 sm:$0xff]   ;;  %v3044_v37 = vld [vmem:[#allocation2 + $0x54] ss:$8 sps:$4 sm:$0xff]   ;;  %v3046_v39 = vld [vmem:[#allocation2 + $0x50] ss:$8 sps:$4 sm:$0xff]  }
  0x38   : > { %995 = vmatpush1.bf16.msra.mxu0 %v3006_v3  ;;  %2751 = vmatpush1.bf16.msra.mxu1 %v3006_v3  ;;  %v3059_v38 = vld [vmem:[#allocation2 + $0x1f4] ss:$8 sps:$4 sm:$0xff]   ;;  %v3061_v40 = vld [vmem:[#allocation2 + $0x1f0] ss:$8 sps:$4 sm:$0xff]   ;;  %v3050_v41 = vld [vmem:[#allocation2 + $0x64] ss:$8 sps:$4 sm:$0xff]  }
  0x39   : > { %996 = vmatprep.subr.bf16.mxu0 %v3228_v0  ;;  %2736 = vmatprep.subr.bf16.mxu1 %v3228_v0  ;;  %v3065_v42 = vld [vmem:[#allocation2 + $0x204] ss:$8 sps:$4 sm:$0xff]   ;;  %v3052_v43 = vld [vmem:[#allocation2 + $0x60] ss:$8 sps:$4 sm:$0xff]   ;;  %v3056_v45 = vld [vmem:[#allocation2 + $0x74] ss:$8 sps:$4 sm:$0xff]  }
  0x3a   : > { %v3067_v44 = vld [vmem:[#allocation2 + $0x200] ss:$8 sps:$4 sm:$0xff]   ;;  %v3071_v46 = vld [vmem:[#allocation2 + $0x214] ss:$8 sps:$4 sm:$0xff]   ;;  %v3058_v47 = vld [vmem:[#allocation2 + $0x70] ss:$8 sps:$4 sm:$0xff]  }
  0x3b   : > { %v3073_v48 = vld [vmem:[#allocation2 + $0x210] ss:$8 sps:$4 sm:$0xff]   ;;  %v3062_v49 = vld [vmem:[#allocation2 + $0x84] ss:$8 sps:$4 sm:$0xff]   ;;  %v3064_v50 = vld [vmem:[#allocation2 + $0x80] ss:$8 sps:$4 sm:$0xff]  }
  0x3c   : > { %997 = vmatpush1.bf16.msra.mxu0 %v3007_v4  ;;  %2752 = vmatpush1.bf16.msra.mxu1 %v3007_v4  ;;  %v3068_v51 = vld [vmem:[#allocation2 + $0x94] ss:$8 sps:$4 sm:$0xff]   ;;  %v3070_v52 = vld [vmem:[#allocation2 + $0x90] ss:$8 sps:$4 sm:$0xff]   ;;  %v3074_v53 = vld [vmem:[#allocation2 + $0xa4] ss:$8 sps:$4 sm:$0xff]  }
  0x3d   : > { %998 = vmatprep.subr.bf16.mxu0 %v3228_v0  ;;  %2737 = vmatprep.subr.bf16.mxu1 %v3228_v0  ;;  %v3122_v54 = vld [vmem:[#allocation2 + $0x224] ss:$8 sps:$4 sm:$0xff]   ;;  %v3124_v55 = vld [vmem:[#allocation2 + $0x220] ss:$8 sps:$4 sm:$0xff]   ;;  %v3125_v56 = vld [vmem:[#allocation2 + $0x234] ss:$8 sps:$4 sm:$0xff]  }
  0x3e   : > { %v3076_v57 = vld [vmem:[#allocation2 + $0xa0] ss:$8 sps:$4 sm:$0xff]   ;;  %v3077_v58 = vld [vmem:[#allocation2 + $0xb4] ss:$8 sps:$4 sm:$0xff]   ;;  %v3127_v59 = vld [vmem:[#allocation2 + $0x230] ss:$8 sps:$4 sm:$0xff]  }
  0x3f   : > { %v3079_v60 = vld [vmem:[#allocation2 + $0xb0] ss:$8 sps:$4 sm:$0xff]   ;;  %v3080_v61 = vld [vmem:[#allocation2 + $0xc4] ss:$8 sps:$4 sm:$0xff]   ;;  %v3082_v62 = vld [vmem:[#allocation2 + $0xc0] ss:$8 sps:$4 sm:$0xff]  }
  0x40   : > { %999 = vmatpush1.bf16.msra.mxu0 %v3008_v5  ;;  %2753 = vmatpush1.bf16.msra.mxu1 %v3008_v5  ;;  %v3083_v63 = vld [vmem:[#allocation2 + $0xd4] ss:$8 sps:$4 sm:$0xff]   ;;  %v3086_v1 = vld [vmem:[#allocation2 + $0xe4] ss:$8 sps:$4 sm:$0xff]   ;;  %v3088_v2 = vld [vmem:[#allocation2 + $0xe0] ss:$8 sps:$4 sm:$0xff]  }
  0x41   : > { %1000 = vmatprep.subr.bf16.mxu0 %v3228_v0  ;;  %2738 = vmatprep.subr.bf16.mxu1 %v3228_v0  ;;  %v3089_v3 = vld [vmem:[#allocation2 + $0xf4] ss:$8 sps:$4 sm:$0xff]   ;;  %v3091_v4 = vld [vmem:[#allocation2 + $0xf0] ss:$8 sps:$4 sm:$0xff]   ;;  %v3092_v5 = vld [vmem:[#allocation2 + $0x104] ss:$8 sps:$4 sm:$0xff]  }
  0x42   : > { %v3094_v6 = vld [vmem:[#allocation2 + $0x100] ss:$8 sps:$4 sm:$0xff]   ;;  %v3097_v8 = vld [vmem:[#allocation2 + $0x110] ss:$8 sps:$4 sm:$0xff]   ;;  %vm3622_vm9 = vmpackc.low %vm1639_vm8, %vm1639_vm8  ;;  %s3242_s26 = smov 40   ;;  %s3244_s14 = smov 56  }
  0x43   : > { %vm2073_vm11 = vcmask 64512   ;;  %vm2076_vm12 = vcmask 130048   ;;  %vm2081_vm13 = vcmask 261120   ;;  %vm2084_vm14 = vcmask 326656  }
  0x44   : > { %1001 = vmatpush1.bf16.msra.mxu0 %v3009_v7  ;;  %2754 = vmatpush1.bf16.msra.mxu1 %v3009_v7  ;;  %v3095_v7 = vld [vmem:[#allocation2 + $0x114] ss:$8 sps:$4 sm:$0xff]   ;;  %vm2087_vm15 = vcmask 392192  }
  0x45   : > { %1002 = vmatprep.subr.bf16.mxu0 %v3228_v0  ;;  %2739 = vmatprep.subr.bf16.mxu1 %v3228_v0 }
  0x48   : > { %1003 = vmatpush1.bf16.msra.mxu0 %v3010_v9  ;;  %2755 = vmatpush1.bf16.msra.mxu1 %v3010_v9  ;;  %v3098_v9 = vld [vmem:[#allocation2 + $0x124] ss:$8 sps:$4 sm:$0xff]  }
  0x49   : > { %1004 = vmatprep.subr.bf16.mxu0 %v3228_v0  ;;  %2740 = vmatprep.subr.bf16.mxu1 %v3228_v0 }
  0x4c   : > { %1005 = vmatpush1.bf16.msra.mxu0 %v3011_v10  ;;  %2756 = vmatpush1.bf16.msra.mxu1 %v3011_v10  ;;  %v3100_v10 = vld [vmem:[#allocation2 + $0x120] ss:$8 sps:$4 sm:$0xff]  }
  0x4d   : > { %1006 = vmatprep.subr.bf16.mxu0 %v3228_v0  ;;  %2741 = vmatprep.subr.bf16.mxu1 %v3228_v0 }
  0x50   : > { %1007 = vmatpush1.bf16.msra.mxu0 %v3012_v11  ;;  %2757 = vmatpush1.bf16.msra.mxu1 %v3012_v11  ;;  %v3101_v11 = vld [vmem:[#allocation2 + $0x134] ss:$8 sps:$4 sm:$0xff]  }
  0x51   : > { %1008 = vmatprep.subr.bf16.mxu0 %v3228_v0  ;;  %2742 = vmatprep.subr.bf16.mxu1 %v3228_v0 }
  0x54   : > { %1009 = vmatpush1.bf16.msra.mxu0 %v3013_v12  ;;  %2758 = vmatpush1.bf16.msra.mxu1 %v3013_v12  ;;  %v3103_v12 = vld [vmem:[#allocation2 + $0x130] ss:$8 sps:$4 sm:$0xff]  }
  0x55   : > { %1010 = vmatprep.subr.bf16.mxu0 %v3228_v0  ;;  %2743 = vmatprep.subr.bf16.mxu1 %v3228_v0 }
  0x58   : > { %1011 = vmatpush1.bf16.msra.mxu0 %v3014_v13  ;;  %2759 = vmatpush1.bf16.msra.mxu1 %v3014_v13  ;;  %v3104_v13 = vld [vmem:[#allocation2 + $0x144] ss:$8 sps:$4 sm:$0xff]  }
  0x59   : > { %1012 = vmatprep.subr.bf16.mxu0 %v3228_v0  ;;  %2744 = vmatprep.subr.bf16.mxu1 %v3228_v0 }
  0x5c   : > { %1013 = vmatpush1.bf16.msra.mxu0 %v3015_v14  ;;  %2760 = vmatpush1.bf16.msra.mxu1 %v3015_v14  ;;  %v3106_v14 = vld [vmem:[#allocation2 + $0x140] ss:$8 sps:$4 sm:$0xff]  }
  0x5d   : > { %1014 = vmatprep.subr.bf16.mxu0 %v3228_v0  ;;  %2745 = vmatprep.subr.bf16.mxu1 %v3228_v0 }
  0x60   : > { %1015 = vmatpush1.bf16.msra.mxu0 %v3016_v15  ;;  %2761 = vmatpush1.bf16.msra.mxu1 %v3016_v15  ;;  %v3107_v15 = vld [vmem:[#allocation2 + $0x154] ss:$8 sps:$4 sm:$0xff]  }
  0x61   : > { %1016 = vmatprep.subr.bf16.mxu0 %v3228_v0  ;;  %2746 = vmatprep.subr.bf16.mxu1 %v3228_v0 }
  0x64   : > { %1017 = vmatpush1.bf16.msra.mxu0 %v3017_v16  ;;  %2762 = vmatpush1.bf16.msra.mxu1 %v3017_v16  ;;  %v3109_v16 = vld [vmem:[#allocation2 + $0x150] ss:$8 sps:$4 sm:$0xff]  }
  0x65   : > { %1018 = vmatprep.subr.bf16.mxu0 %v3228_v0  ;;  %2747 = vmatprep.subr.bf16.mxu1 %v3228_v0 }
  0x68   : > { %1019 = vmatpush1.bf16.msra.mxu0 %v3018_v17  ;;  %2763 = vmatpush1.bf16.msra.mxu1 %v3018_v17  ;;  %v3110_v17 = vld [vmem:[#allocation2 + $0x164] ss:$8 sps:$4 sm:$0xff]  }
  0x69   : > { %1020 = vmatprep.subr.bf16.mxu0 %v3228_v0  ;;  %2748 = vmatprep.subr.bf16.mxu1 %v3228_v0  ;;  %v3085_v0 = vld [vmem:[#allocation2 + $0xd0] ss:$8 sps:$4 sm:$0xff]  }
  0x6c   : > { %1021 = vmatpush1.bf16.msra.mxu0 %v3019_v18  ;;  %2764 = vmatpush1.bf16.msra.mxu1 %v3019_v18  ;;  %v3112_v18 = vld [vmem:[#allocation2 + $0x160] ss:$8 sps:$4 sm:$0xff]  }
  0x6f   : > { %1023 = vmatmul.mubr.bf16.vlgmr.msra.gmra.mrb[0].mxu0 %v3020_v19  ;;  %1231 = vmatmul.mubr.bf16.vlgmr.msra.gmra.mrb[0].mxu1 %v3026_v20  ;;  %v3113_v19 = vld [vmem:[#allocation2 + $0x174] ss:$8 sps:$4 sm:$0xff]   ;;  %v3115_v20 = vld [vmem:[#allocation2 + $0x170] ss:$8 sps:$4 sm:$0xff]  }
  0x70   : > { %1030 = vmatprep.mubr.bf16.mxu0 %v3023_v21  ;;  %1238 = vmatprep.mubr.bf16.mxu1 %v3032_v22  ;;  %v3116_v21 = vld [vmem:[#allocation2 + $0x184] ss:$8 sps:$4 sm:$0xff]   ;;  %v3118_v22 = vld [vmem:[#allocation2 + $0x180] ss:$8 sps:$4 sm:$0xff]  }
  0x77   : > { %1031 = vmatmul.mubr.bf16.gmra.mrb[4].mxu0 %v3025_v23  ;;  %1239 = vmatmul.mubr.bf16.gmra.mrb[4].mxu1 %v3034_v24  ;;  %v3119_v23 = vld [vmem:[#allocation2 + $0x194] ss:$8 sps:$4 sm:$0xff]   ;;  %v3121_v24 = vld [vmem:[#allocation2 + $0x190] ss:$8 sps:$4 sm:$0xff]  }
  0x78   : > { %1038 = vmatprep.mubr.bf16.mxu0 %v3029_v25  ;;  %1246 = vmatprep.mubr.bf16.mxu1 %v3038_v26 }
  0x7f   : > { %1039 = vmatmul.mubr.bf16.gmra.mrb[8].mxu0 %v3031_v27  ;;  %1247 = vmatmul.mubr.bf16.gmra.mrb[8].mxu1 %v3040_v28 }
  0x80   : > { %1046 = vmatprep.mubr.bf16.mxu0 %v3035_v29  ;;  %1254 = vmatprep.mubr.bf16.mxu1 %v3047_v30 }
  0x87   : > { %1047 = vmatmul.mubr.bf16.gmra.mrb[12].mxu0 %v3037_v31  ;;  %1255 = vmatmul.mubr.bf16.gmra.mrb[12].mxu1 %v3049_v32 }
  0x88   : > { %1054 = vmatprep.mubr.bf16.mxu0 %v3041_v33  ;;  %1262 = vmatprep.mubr.bf16.mxu1 %v3053_v34 }
  0x8f   : > { %1055 = vmatmul.mubr.bf16.gmra.mrb[16].mxu0 %v3043_v35  ;;  %1263 = vmatmul.mubr.bf16.gmra.mrb[16].mxu1 %v3055_v36 }
  0x90   : > { %1062 = vmatprep.mubr.bf16.mxu0 %v3044_v37  ;;  %1270 = vmatprep.mubr.bf16.mxu1 %v3059_v38 }
  0x97   : > { %1063 = vmatmul.mubr.bf16.gmra.mrb[20].mxu0 %v3046_v39  ;;  %1271 = vmatmul.mubr.bf16.gmra.mrb[20].mxu1 %v3061_v40 }
  0x98   : > { %1070 = vmatprep.mubr.bf16.mxu0 %v3050_v41  ;;  %1278 = vmatprep.mubr.bf16.mxu1 %v3065_v42 }
  0x9f   : > { %1071 = vmatmul.mubr.bf16.gmra.mrb[24].mxu0 %v3052_v43  ;;  %1279 = vmatmul.mubr.bf16.gmra.mrb[24].mxu1 %v3067_v44 }
  0xa0   : > { %1078 = vmatprep.mubr.bf16.mxu0 %v3056_v45  ;;  %1286 = vmatprep.mubr.bf16.mxu1 %v3071_v46 }
  0xa7   : > { %1079 = vmatmul.mubr.bf16.gmra.mrb[28].mxu0 %v3058_v47  ;;  %1287 = vmatmul.mubr.bf16.gmra.mrb[28].mxu1 %v3073_v48 }
  0xa8   : > { %1086 = vmatprep.mubr.bf16.mxu0 %v3062_v49  ;;  %1294 = vmatprep.mubr.bf16.mxu1 %v3122_v54 }
  0xaf   : > { %1087 = vmatmul.mubr.bf16.gmra.mrb[32].mxu0 %v3064_v50  ;;  %1295 = vmatmul.mubr.bf16.gmra.mrb[32].mxu1 %v3124_v55 }
  0xb0   : > { %1094 = vmatprep.mubr.bf16.mxu0 %v3068_v51  ;;  %1302 = vmatprep.mubr.bf16.mxu1 %v3125_v56 }
  0xb7   : > { %1095 = vmatmul.mubr.bf16.gmra.mrb[36].mxu0 %v3070_v52  ;;  %1303 = vmatmul.mubr.bf16.gmra.mrb[36].mxu1 %v3127_v59 }
  0xb8   : > { %1102 = vmatprep.mubr.bf16.mxu0 %v3074_v53 }
  0xbf   : > { %1103 = vmatmul.mubr.bf16.gmra.mrb[40].mxu0 %v3076_v57 }
  0xc0   : > { %1110 = vmatprep.mubr.bf16.mxu0 %v3077_v58 }
  0xc7   : > { %1111 = vmatmul.mubr.bf16.gmra.mrb[44].mxu0 %v3079_v60 }
  0xc8   : > { %1118 = vmatprep.mubr.bf16.mxu0 %v3080_v61 }
  0xcf   : > { %1119 = vmatmul.mubr.bf16.gmra.mrb[48].mxu0 %v3082_v62 }
  0xd0   : > { %1126 = vmatprep.mubr.bf16.mxu0 %v3083_v63 }
  0xd7   : > { %1127 = vmatmul.mubr.bf16.gmra.mrb[52].mxu0 %v3085_v0 }
  0xd8   : > { %1134 = vmatprep.mubr.bf16.mxu0 %v3086_v1 }
  0xdf   : > { %1135 = vmatmul.mubr.bf16.gmra.mrb[56].mxu0 %v3088_v2 }
  0xe0   : > { %1142 = vmatprep.mubr.bf16.mxu0 %v3089_v3 }
  0xe7   : > { %1143 = vmatmul.mubr.bf16.gmra.mrb[60].mxu0 %v3091_v4 }
  0xe8   : > { %1150 = vmatprep.mubr.bf16.mxu0 %v3092_v5 }
  0xef   : > { %1151 = vmatmul.mubr.bf16.gmra.mrb[64].mxu0 %v3094_v6 }
  0xf0   : > { %1158 = vmatprep.mubr.bf16.mxu0 %v3095_v7 }
  0xf7   : > { %1159 = vmatmul.mubr.bf16.gmra.mrb[68].mxu0 %v3097_v8 }
  0xf8   : > { %1166 = vmatprep.mubr.bf16.mxu0 %v3098_v9 }
  0xff   : > { %1167 = vmatmul.mubr.bf16.gmra.mrb[72].mxu0 %v3100_v10 }
 0x100   : > { %1174 = vmatprep.mubr.bf16.mxu0 %v3101_v11 }
 0x107   : > { %1175 = vmatmul.mubr.bf16.gmra.mrb[76].mxu0 %v3103_v12 }
 0x108   : > { %1182 = vmatprep.mubr.bf16.mxu0 %v3104_v13 }
 0x10f   : > { %1183 = vmatmul.mubr.bf16.gmra.mrb[80].mxu0 %v3106_v14 }
 0x110   : > { %1190 = vmatprep.mubr.bf16.mxu0 %v3107_v15 }
 0x117   : > { %1191 = vmatmul.mubr.bf16.gmra.mrb[84].mxu0 %v3109_v16 }
 0x118   : > { %1198 = vmatprep.mubr.bf16.mxu0 %v3110_v17 }
 0x11f   : > { %1199 = vmatmul.mubr.bf16.gmra.mrb[88].mxu0 %v3112_v18 }
 0x120   : > { %1206 = vmatprep.mubr.bf16.mxu0 %v3113_v19 }
 0x127   : > { %1207 = vmatmul.mubr.bf16.gmra.mrb[92].mxu0 %v3115_v20 }
 0x128   : > { %1214 = vmatprep.mubr.bf16.mxu0 %v3116_v21 }
 0x12f   : > { %1215 = vmatmul.mubr.bf16.gmra.mrb[96].mxu0 %v3118_v22 }
 0x130   : > { %1222 = vmatprep.mubr.bf16.mxu0 %v3119_v23 }
 0x137   : > { %1223 = vmatmul.mubr.bf16.gmra.mrb[100].mxu0 %v3121_v24 }
 0x142   : > { %v3414_v25 = vpop.f32.mrb[0].mxu0  ;;  %v3416_v26 = vpop.f32.mrb[0].mxu1 }
 0x143   : > { %v1026_v27 = vpop.f32.mrb[1].mxu0  ;;  %v1234_v28 = vpop.f32.mrb[1].mxu1 }
 0x144   : > { %v3418_v29 = vpop.f32.mrb[2].mxu0  ;;  %v3420_v30 = vpop.f32.mrb[2].mxu1 }
 0x145   : > { %v1029_v31 = vpop.f32.mrb[3].mxu0  ;;  %v2929_v32 = vpack.i.bf16 %v3420_v30, %v3416_v26  ;;  %v1237_v33 = vpop.f32.mrb[3].mxu1 }
 0x14a   : > { %v3424_v34 = vpop.f32.mrb[4].mxu0  ;;  %v3426_v35 = vpop.f32.mrb[4].mxu1 }
 0x14b   : > { %v1034_v36 = vpop.f32.mrb[5].mxu0  ;;  %v1242_v37 = vpop.f32.mrb[5].mxu1 }
 0x14c   : > { %v3428_v38 = vpop.f32.mrb[6].mxu0  ;;  %v3430_v39 = vpop.f32.mrb[6].mxu1 }
 0x14d   : > { %v1037_v40 = vpop.f32.mrb[7].mxu0  ;;  %v2939_v41 = vpack.i.bf16 %v3430_v39, %v3426_v35  ;;  %v1245_v42 = vpop.f32.mrb[7].mxu1 }
 0x152   : > { %v3434_v43 = vpop.f32.mrb[8].mxu0  ;;  %v1248_v44 = vpop.f32.mrb[8].mxu1 }
 0x153   : > { %v1042_v45 = vpop.f32.mrb[9].mxu0  ;;  %v1250_v46 = vpop.f32.mrb[9].mxu1 }
 0x154   : > { %v3436_v47 = vpop.f32.mrb[10].mxu0  ;;  %v1251_v48 = vpop.f32.mrb[10].mxu1 }
 0x155   : > { %v1045_v49 = vpop.f32.mrb[11].mxu0  ;;  %v2804_v50 = vpack.i.bf16 %v1251_v48, %v1248_v44  ;;  %v1253_v51 = vpop.f32.mrb[11].mxu1 }
 0x157   : > { %2805 = vrot.lane.b32.xlu0 %v2804_v50, %s3229_s27 }
 0x15a   : > { %v3439_v52 = vpop.f32.mrb[12].mxu0  ;;  %v1256_v53 = vpop.f32.mrb[12].mxu1 }
 0x15b   : > { %v1050_v54 = vpop.f32.mrb[13].mxu0  ;;  %v1258_v55 = vpop.f32.mrb[13].mxu1 }
 0x15c   : > { %v3441_v56 = vpop.f32.mrb[14].mxu0  ;;  %v1259_v57 = vpop.f32.mrb[14].mxu1 }
 0x15d   : > { %v1053_v58 = vpop.f32.mrb[15].mxu0  ;;  %v2809_v59 = vpack.i.bf16 %v1259_v57, %v1256_v53  ;;  %v1261_v60 = vpop.f32.mrb[15].mxu1 }
 0x15f   : > { %2810 = vrot.lane.b32.xlu1 %v2809_v59, %s3229_s27 }
 0x162   : > { %v1056_v61 = vpop.f32.mrb[16].mxu0  ;;  %v3444_v62 = vpop.f32.mrb[16].mxu1 }
 0x163   : > { %v1058_v63 = vpop.f32.mrb[17].mxu0  ;;  %v1266_v0 = vpop.f32.mrb[17].mxu1 }
 0x164   : > { %v1059_v1 = vpop.f32.mrb[18].mxu0  ;;  %v3446_v2 = vpop.f32.mrb[18].mxu1 }
 0x165   : > { %v2814_v3 = vpack.i.bf16 %v1059_v1, %v1056_v61  ;;  %v1061_v4 = vpop.f32.mrb[19].mxu0  ;;  %v2944_v5 = vpack.i.bf16 %v3446_v2, %v3444_v62  ;;  %v1269_v6 = vpop.f32.mrb[19].mxu1 }
 0x167   : > { %2815 = vrot.lane.b32.xlu0 %v2814_v3, %s3230_s28 }
 0x16a   : > { %v1064_v7 = vpop.f32.mrb[20].mxu0  ;;  %v3451_v8 = vpop.f32.mrb[20].mxu1 }
 0x16b   : > { %v1066_v9 = vpop.f32.mrb[21].mxu0  ;;  %v1274_v10 = vpop.f32.mrb[21].mxu1 }
 0x16c   : > { %v1067_v11 = vpop.f32.mrb[22].mxu0  ;;  %v3453_v12 = vpop.f32.mrb[22].mxu1 }
 0x16d   : > { %v2819_v13 = vpack.i.bf16 %v1067_v11, %v1064_v7  ;;  %v1069_v14 = vpop.f32.mrb[23].mxu0  ;;  %v2949_v15 = vpack.i.bf16 %v3453_v12, %v3451_v8  ;;  %v1277_v16 = vpop.f32.mrb[23].mxu1 }
 0x16f   : > { %2820 = vrot.lane.b32.xlu0 %v2819_v13, %s3230_s28 }
 0x172   : > { %v1072_v17 = vpop.f32.mrb[24].mxu0  ;;  %v1280_v18 = vpop.f32.mrb[24].mxu1 }
 0x173   : > { %v1074_v19 = vpop.f32.mrb[25].mxu0  ;;  %v1282_v20 = vpop.f32.mrb[25].mxu1 }
 0x174   : > { %v1075_v21 = vpop.f32.mrb[26].mxu0  ;;  %v1283_v22 = vpop.f32.mrb[26].mxu1 }
 0x175   : > { %v2829_v23 = vpack.i.bf16 %v1075_v21, %v1072_v17  ;;  %v1077_v24 = vpop.f32.mrb[27].mxu0  ;;  %v2824_v27 = vpack.i.bf16 %v1283_v22, %v1280_v18  ;;  %v1285_v28 = vpop.f32.mrb[27].mxu1 }
 0x177   : > { %2830 = vrot.lane.b32.xlu1 %v2829_v23, %s3230_s28  ;;  %2825 = vrot.lane.b32.xlu0 %v2824_v27, %s3231_s29 }
 0x17a   : > { %v1080_v31 = vpop.f32.mrb[28].mxu0  ;;  %v1288_v33 = vpop.f32.mrb[28].mxu1 }
 0x17b   : > { %v1082_v36 = vpop.f32.mrb[29].mxu0  ;;  %v1290_v37 = vpop.f32.mrb[29].mxu1 }
 0x17c   : > { %v1083_v40 = vpop.f32.mrb[30].mxu0  ;;  %v1291_v42 = vpop.f32.mrb[30].mxu1 }
 0x17d   : > { %v2839_v44 = vpack.i.bf16 %v1083_v40, %v1080_v31  ;;  %v1085_v45 = vpop.f32.mrb[31].mxu0  ;;  %v2834_v46 = vpack.i.bf16 %v1291_v42, %v1288_v33  ;;  %v1293_v48 = vpop.f32.mrb[31].mxu1 }
 0x17f   : > { %2840 = vrot.lane.b32.xlu1 %v2839_v44, %s3230_s28  ;;  %2835 = vrot.lane.b32.xlu0 %v2834_v46, %s3231_s29  ;;  %s3235_s28 = smov 15  }
 0x182   : > { %v1088_v49 = vpop.f32.mrb[32].mxu0  ;;  %v3462_v58 = vpop.f32.mrb[32].mxu1 }
 0x183   : > { %v1090_v50 = vpop.f32.mrb[33].mxu0  ;;  %v1298_v60 = vpop.f32.mrb[33].mxu1 }
 0x184   : > { %v1091_v51 = vpop.f32.mrb[34].mxu0  ;;  %v3464_v0 = vpop.f32.mrb[34].mxu1 }
 0x185   : > { %v2844_v53 = vpack.i.bf16 %v1091_v51, %v1088_v49  ;;  %v1093_v54 = vpop.f32.mrb[35].mxu0  ;;  %v2954_v1 = vpack.i.bf16 %v3464_v0, %v3462_v58  ;;  %v1301_v3 = vpop.f32.mrb[35].mxu1 }
 0x186   : > { %v3128_v54 = vld [vmem:[%s3863_s2] sm:$0xff]  }
 0x187   : > { %2845 = vrot.lane.b32.xlu1 %v2844_v53, %s3232_s30  ;;  %2625 = vmatprep.subr.bf16.mxu1 %v3128_v54 }
 0x188   : > { %2626 = vmatpush3.bf16.msra.mxu1 %v3128_v54 }
 0x18a   : > { %v1096_v55 = vpop.f32.mrb[36].mxu0  ;;  %v3468_v7 = vpop.f32.mrb[36].mxu1 }
 0x18b   : > { %v1098_v57 = vpop.f32.mrb[37].mxu0  ;;  %v1306_v10 = vpop.f32.mrb[37].mxu1 }
 0x18c   : > { %v1099_v59 = vpop.f32.mrb[38].mxu0  ;;  %v3470_v14 = vpop.f32.mrb[38].mxu1 }
 0x18d   : > { %v2849_v61 = vpack.i.bf16 %v1099_v59, %v1096_v55  ;;  %v1101_v63 = vpop.f32.mrb[39].mxu0  ;;  %v2959_v16 = vpack.i.bf16 %v3470_v14, %v3468_v7  ;;  %v1309_v17 = vpop.f32.mrb[39].mxu1 }
 0x18e   : > { %v3129_v63 = vld [vmem:[%s3863_s2 + $0x8] sm:$0xff]  }
 0x18f   : > { %2850 = vrot.lane.b32.xlu1 %v2849_v61, %s3232_s30  ;;  %2627 = vmatprep.subr.bf16.mxu1 %v3129_v63 }
 0x190   : > { %2628 = vmatpush3.bf16.msra.mxu1 %v3129_v63 }
 0x192   : > { %v1104_v4 = vpop.f32.mrb[40].mxu0 }
 0x193   : > { %v1106_v6 = vpop.f32.mrb[41].mxu0 }
 0x194   : > { %v1107_v9 = vpop.f32.mrb[42].mxu0 }
 0x195   : > { %v2854_v11 = vpack.i.bf16 %v1107_v9, %v1104_v4  ;;  %v1109_v13 = vpop.f32.mrb[43].mxu0 }
 0x197   : > { %2855 = vrot.lane.b32.xlu0 %v2854_v11, %s3232_s30  ;;  %v3130_v11 = vld [vmem:[%s3863_s2 + $0x10] sm:$0xff]  }
 0x198   : > { %2629 = vmatprep.subr.bf16.mxu1 %v3130_v11 }
 0x199   : > { %2630 = vmatpush3.bf16.msra.mxu1 %v3130_v11 }
 0x19a   : > { %v1112_v18 = vpop.f32.mrb[44].mxu0 }
 0x19b   : > { %v1114_v19 = vpop.f32.mrb[45].mxu0 }
 0x19c   : > { %v1115_v20 = vpop.f32.mrb[46].mxu0 }
 0x19d   : > { %v2859_v21 = vpack.i.bf16 %v1115_v20, %v1112_v18  ;;  %v1117_v22 = vpop.f32.mrb[47].mxu0 }
 0x19f   : > { %2860 = vrot.lane.b32.xlu1 %v2859_v21, %s3232_s30  ;;  %v3131_v21 = vld [vmem:[%s3863_s2 + $0x18] sm:$0xff]   ;;  %s2581_s30 = sshll.u32 %s3884_s22, 4 }
 0x1a0   : > { %2631 = vmatprep.subr.bf16.mxu1 %v3131_v21 }
 0x1a1   : > { %2632 = vmatpush3.bf16.msra.mxu1 %v3131_v21 }
 0x1a2   : > { %v1120_v23 = vpop.f32.mrb[48].mxu0 }
 0x1a3   : > { %v1122_v24 = vpop.f32.mrb[49].mxu0 }
 0x1a4   : > { %v1123_v27 = vpop.f32.mrb[50].mxu0 }
 0x1a5   : > { %v2864_v28 = vpack.i.bf16 %v1123_v27, %v1120_v23  ;;  %v1125_v31 = vpop.f32.mrb[51].mxu0 }
 0x1a7   : > { %2865 = vrot.lane.b32.xlu0 %v2864_v28, %s3233_s13 }
 0x1aa   : > { %v1128_v33 = vpop.f32.mrb[52].mxu0 }
 0x1ab   : > { %v1130_v36 = vpop.f32.mrb[53].mxu0 }
 0x1ac   : > { %v1131_v37 = vpop.f32.mrb[54].mxu0 }
 0x1ad   : > { %v2869_v40 = vpack.i.bf16 %v1131_v37, %v1128_v33  ;;  %v1133_v42 = vpop.f32.mrb[55].mxu0 }
 0x1ae   : > { %v3132_v42 = vld [vmem:[%s3863_s2 + $0x20] sm:$0xff]  }
 0x1af   : > { %2870 = vrot.lane.b32.xlu1 %v2869_v40, %s3233_s13  ;;  %2633 = vmatprep.subr.bf16.mxu1 %v3132_v42 }
 0x1b0   : > { %2634 = vmatpush3.bf16.msra.mxu1 %v3132_v42 }
 0x1b2   : > { %v1136_v44 = vpop.f32.mrb[56].mxu0 }
 0x1b3   : > { %v1138_v45 = vpop.f32.mrb[57].mxu0 }
 0x1b4   : > { %v1139_v46 = vpop.f32.mrb[58].mxu0 }
 0x1b5   : > { %v2874_v48 = vpack.i.bf16 %v1139_v46, %v1136_v44  ;;  %v1141_v49 = vpop.f32.mrb[59].mxu0 }
 0x1b7   : > { %2875 = vrot.lane.b32.xlu0 %v2874_v48, %s3233_s13 }
 0x1ba   : > { %v1144_v50 = vpop.f32.mrb[60].mxu0 }
 0x1bb   : > { %v1146_v51 = vpop.f32.mrb[61].mxu0 }
 0x1bc   : > { %v1147_v53 = vpop.f32.mrb[62].mxu0 }
 0x1bd   : > { %v2879_v55 = vpack.i.bf16 %v1147_v53, %v1144_v50  ;;  %v1149_v57 = vpop.f32.mrb[63].mxu0  ;;  %v3133_v50 = vld [vmem:[%s3863_s2 + $0x28] sm:$0xff]  }
 0x1be   : > { %2635 = vmatprep.subr.bf16.mxu1 %v3133_v50 }
 0x1bf   : > { %2880 = vrot.lane.b32.xlu1 %v2879_v55, %s3233_s13  ;;  %2636 = vmatpush3.bf16.msra.mxu1 %v3133_v50  ;;  %s3243_s13 = smov 48  }
 0x1c2   : > { %v1152_v59 = vpop.f32.mrb[64].mxu0 }
 0x1c3   : > { %v1154_v60 = vpop.f32.mrb[65].mxu0 }
 0x1c4   : > { %v1155_v61 = vpop.f32.mrb[66].mxu0 }
 0x1c5   : > { %v2884_v3 = vpack.i.bf16 %v1155_v61, %v1152_v59  ;;  %v1157_v4 = vpop.f32.mrb[67].mxu0  ;;  %v3134_v59 = vld [vmem:[%s3863_s2 + $0x30] sm:$0xff]  }
 0x1c6   : > { %2637 = vmatprep.subr.bf16.mxu1 %v3134_v59 }
 0x1c7   : > { %2885 = vrot.lane.b32.xlu0 %v2884_v3, %s3234_s18  ;;  %2638 = vmatpush3.bf16.msra.mxu1 %v3134_v59 }
 0x1c9   : > { %v3520_v26 = vpop.permute.xlu0 %2805 }
 0x1ca   : > { %v1160_v6 = vpop.f32.mrb[68].mxu0  ;;  %v2807_v42 = vunpack.i.l.bf16 %v3520_v26 }
 0x1cb   : > { %v1162_v9 = vpop.f32.mrb[69].mxu0 }
 0x1cc   : > { %v1163_v10 = vpop.f32.mrb[70].mxu0 }
 0x1cd   : > { %v2889_v13 = vpack.i.bf16 %v1163_v10, %v1160_v6  ;;  %v1165_v17 = vpop.f32.mrb[71].mxu0  ;;  %v3135_v10 = vld [vmem:[%s3863_s2 + $0x38] sm:$0xff]  }
 0x1ce   : > { %2639 = vmatprep.subr.bf16.mxu1 %v3135_v10 }
 0x1cf   : > { %2890 = vrot.lane.b32.xlu1 %v2889_v13, %s3234_s18  ;;  %2640 = vmatpush3.bf16.msra.mxu1 %v3135_v10 }
 0x1d1   : > { %v3522_v62 = vpop.permute.xlu1 %2810 }
 0x1d2   : > { %v1168_v18 = vpop.f32.mrb[72].mxu0 }
 0x1d3   : > { %v1170_v19 = vpop.f32.mrb[73].mxu0 }
 0x1d4   : > { %v1171_v20 = vpop.f32.mrb[74].mxu0 }
 0x1d5   : > { %v2894_v22 = vpack.i.bf16 %v1171_v20, %v1168_v18  ;;  %v1173_v23 = vpop.f32.mrb[75].mxu0 }
 0x1d7   : > { %2895 = vrot.lane.b32.xlu0 %v2894_v22, %s3234_s18 }
 0x1d9   : > { %v2816_v30 = vpop.permute.xlu0 %2815 }
 0x1da   : > { %v1176_v24 = vpop.f32.mrb[76].mxu0  ;;  %v2818_v14 = vunpack.i.h.bf16 %v2816_v30 }
 0x1db   : > { %v1178_v27 = vpop.f32.mrb[77].mxu0 }
 0x1dc   : > { %v1179_v28 = vpop.f32.mrb[78].mxu0 }
 0x1dd   : > { %v2899_v31 = vpack.i.bf16 %v1179_v28, %v1176_v24  ;;  %v1181_v33 = vpop.f32.mrb[79].mxu0 }
 0x1df   : > { %2900 = vrot.lane.b32.xlu1 %v2899_v31, %s3234_s18  ;;  %s3236_s18 = smov 18  }
 0x1e2   : > { %v1184_v36 = vpop.f32.mrb[80].mxu0 }
 0x1e3   : > { %v1186_v37 = vpop.f32.mrb[81].mxu0 }
 0x1e4   : > { %v1187_v40 = vpop.f32.mrb[82].mxu0 }
 0x1e5   : > { %v2904_v44 = vpack.i.bf16 %v1187_v40, %v1184_v36  ;;  %v1189_v45 = vpop.f32.mrb[83].mxu0  ;;  %v2808_v36 = vunpack.i.h.bf16 %v3520_v26 }
 0x1e6   : > { %v2812_v45 = vunpack.i.l.bf16 %v3522_v62 }
 0x1e7   : > { %2905 = vrot.lane.b32.xlu0 %v2904_v44, %s3235_s28  ;;  %v2813_v44 = vunpack.i.h.bf16 %v3522_v62 }
 0x1e9   : > { %v2831_v35 = vpop.permute.xlu1 %2830 }
 0x1ea   : > { %v1192_v46 = vpop.f32.mrb[84].mxu0  ;;  %v2833_v37 = vunpack.i.h.bf16 %v2831_v35  ;;  %v2832_v40 = vunpack.i.l.bf16 %v2831_v35 }
 0x1eb   : > { %v1194_v48 = vpop.f32.mrb[85].mxu0 }
 0x1ec   : > { %v1195_v49 = vpop.f32.mrb[86].mxu0  ;;  %v1569_v48 = vsel %vm1567_vm0, %v3418_v29, %v2818_v14  ;;  %v1573_v29 = vsel %vm1567_vm0, %v3436_v47, %v2833_v37 }
 0x1ed   : > { %v2909_v51 = vpack.i.bf16 %v1195_v49, %v1192_v46  ;;  %v1197_v53 = vpop.f32.mrb[87].mxu0 }
 0x1ef   : > { %2910 = vrot.lane.b32.xlu1 %v2909_v51, %s3235_s28 }
 0x1f2   : > { %v1200_v54 = vpop.f32.mrb[88].mxu0 }
 0x1f3   : > { %v1202_v55 = vpop.f32.mrb[89].mxu0 }
 0x1f4   : > { %v1203_v57 = vpop.f32.mrb[90].mxu0 }
 0x1f5   : > { %v2914_v60 = vpack.i.bf16 %v1203_v57, %v1200_v54  ;;  %v1205_v61 = vpop.f32.mrb[91].mxu0 }
 0x1f7   : > { %2915 = vrot.lane.b32.xlu0 %v2914_v60, %s3235_s28 }
 0x1fa   : > { %v1208_v63 = vpop.f32.mrb[92].mxu0 }
 0x1fb   : > { %v1210_v3 = vpop.f32.mrb[93].mxu0 }
 0x1fc   : > { %v1211_v4 = vpop.f32.mrb[94].mxu0 }
 0x1fd   : > { %v2919_v6 = vpack.i.bf16 %v1211_v4, %v1208_v63  ;;  %v1213_v9 = vpop.f32.mrb[95].mxu0 }
 0x1ff   : > { %2920 = vrot.lane.b32.xlu1 %v2919_v6, %s3235_s28 }
 0x202   : > { %v1216_v11 = vpop.f32.mrb[96].mxu0 }
 0x203   : > { %v1218_v13 = vpop.f32.mrb[97].mxu0 }
 0x204   : > { %v1219_v17 = vpop.f32.mrb[98].mxu0 }
 0x205   : > { %v2924_v18 = vpack.i.bf16 %v1219_v17, %v1216_v11  ;;  %v1221_v19 = vpop.f32.mrb[99].mxu0 }
 0x207   : > { %2925 = vrot.lane.b32.xlu0 %v2924_v18, %s3236_s18 }
 0x20a   : > { %v1224_v20 = vpop.f32.mrb[100].mxu0 }
 0x20b   : > { %2930 = vrot.lane.b32.xlu0 %v2929_v32, %s3236_s18  ;;  %v1226_v21 = vpop.f32.mrb[101].mxu0  ;;  %v2821_v32 = vpop.permute.xlu0 %2820 }
 0x20c   : > { %v1227_v22 = vpop.f32.mrb[102].mxu0  ;;  %v2823_v27 = vunpack.i.h.bf16 %v2821_v32  ;;  %v2822_v28 = vunpack.i.l.bf16 %v2821_v32 }
 0x20d   : > { %v2934_v23 = vpack.i.bf16 %v1227_v22, %v1224_v20  ;;  %v1229_v24 = vpop.f32.mrb[103].mxu0 }
 0x20e   : > { %v1571_v50 = vsel %vm1567_vm0, %v3428_v38, %v2823_v27  ;;  %v1570_v51 = vsel %vm1567_vm0, %v3424_v34, %v2822_v28 }
 0x20f   : > { %2945 = vrot.lane.b32.xlu0 %v2944_v5, %s3229_s27  ;;  %2935 = vrot.lane.b32.xlu1 %v2934_v23, %s3236_s18  ;;  %v3524_v2 = vpop.permute.xlu0 %2825 }
 0x210   : > { %v2828_v55 = vunpack.i.h.bf16 %v3524_v2  ;;  %v2827_v57 = vunpack.i.l.bf16 %v3524_v2 }
 0x213   : > { %2955 = vrot.lane.b32.xlu0 %v2954_v1, %s3231_s29  ;;  %2940 = vrot.lane.b32.xlu1 %v2939_v41, %s3236_s18  ;;  %v3526_v39 = vpop.permute.xlu0 %2835  ;;  %v3528_v41 = vpop.permute.xlu1 %2840  ;;  %s3240_s18 = smov 16  }
 0x214   : > { %v2843_v46 = vunpack.i.h.bf16 %v3528_v41  ;;  %v2842_v38 = vunpack.i.l.bf16 %v3528_v41  ;;  %v2838_v34 = vunpack.i.h.bf16 %v3526_v39  ;;  %v2837_v3 = vunpack.i.l.bf16 %v3526_v39 }
 0x216   : > { %v3571_v61 = vsel %vm1567_vm0, %v3441_v56, %v2843_v46  ;;  %v1574_v39 = vsel %vm1567_vm0, %v3439_v52, %v2842_v38 }
 0x217   : > { %2950 = vrot.lane.b32.xlu1 %v2949_v15, %s3229_s27  ;;  %v2846_v5 = vpop.permute.xlu1 %2845  ;;  %v3530_v8 = vpop.permute.xlu0 %2855  ;;  %s428_s27 = scalar_lea.vmem %s3873_s12, %s2581_s30 }
 0x218   : > { %v2848_v53 = vunpack.i.h.bf16 %v2846_v5  ;;  %v2847_v54 = vunpack.i.l.bf16 %v2846_v5  ;;  %v2858_v6 = vunpack.i.h.bf16 %v3530_v8  ;;  %v2857_v47 = vunpack.i.l.bf16 %v3530_v8 }
 0x21a   : > { %v1582_v24 = vsel %vm1576_vm1, %v1573_v29, %v2858_v6 }
 0x21b   : > { %2960 = vrot.lane.b32.xlu1 %v2959_v16, %s3231_s29  ;;  %v2851_v12 = vpop.permute.xlu1 %2850  ;;  %v3532_v15 = vpop.permute.xlu0 %2865  ;;  %v2817_v16 = vunpack.i.l.bf16 %v2816_v30 }
 0x21c   : > { %v2853_v63 = vunpack.i.h.bf16 %v2851_v12  ;;  %v2852_v4 = vunpack.i.l.bf16 %v2851_v12  ;;  %v2868_v10 = vunpack.i.h.bf16 %v3532_v15  ;;  %v2867_v11 = vunpack.i.l.bf16 %v3532_v15 }
 0x21d   : > { %v1568_v49 = vsel %vm1567_vm0, %v3414_v25, %v2817_v16  ;;  %v1572_v25 = vsel %vm1567_vm0, %v3434_v43, %v2832_v40  ;;  %v1578_v43 = vsel %vm1576_vm1, %v1569_v48, %v2848_v53  ;;  %vm2090_vm0 = vcmask 457728  }
 0x21e   : > { %v1577_v9 = vsel %vm1576_vm1, %v1568_v49, %v2847_v54  ;;  %v1580_v19 = vsel %vm1576_vm1, %v1571_v50, %v2853_v63  ;;  %v1579_v23 = vsel %vm1576_vm1, %v1570_v51, %v2852_v4  ;;  %v1581_v30 = vsel %vm1576_vm1, %v1572_v25, %v2857_v47 }
 0x21f   : > { %v3534_v58 = vpop.permute.xlu1 %2860  ;;  %v1587_v5 = vsel %vm1585_vm2, %v1578_v43, %v2868_v10  ;;  %v1586_v8 = vsel %vm1585_vm2, %v1577_v9, %v2867_v11 }
 0x220   : > { %v2863_v2 = vunpack.i.h.bf16 %v3534_v58  ;;  %v2862_v35 = vunpack.i.l.bf16 %v3534_v58 }
 0x222   : > { %v1583_v41 = vsel %vm1576_vm1, %v1574_v39, %v2862_v35 }
 0x223   : > { %v3538_v1 = vpop.permute.xlu1 %2870 }
 0x224   : > { %v2873_v20 = vunpack.i.h.bf16 %v3538_v1  ;;  %v2872_v32 = vunpack.i.l.bf16 %v3538_v1 }
 0x226   : > { %v1589_v28 = vsel %vm1585_vm2, %v1580_v19, %v2873_v20  ;;  %v1588_v46 = vsel %vm1585_vm2, %v1579_v23, %v2872_v32 }
 0x229   : > { %v3536_v0 = vpop.permute.xlu0 %2875 }
 0x22a   : > { %v2878_v1 = vunpack.i.h.bf16 %v3536_v0  ;;  %v2877_v48 = vunpack.i.l.bf16 %v3536_v0 }
 0x22c   : > { %v1590_v43 = vsel %vm1585_vm2, %v1581_v30, %v2877_v48 }
 0x231   : > { %v3542_v31 = vpop.permute.xlu1 %2880 }
 0x232   : > { %v2883_v9 = vunpack.i.h.bf16 %v3542_v31 }
 0x239   : > { %v3540_v7 = vpop.permute.xlu0 %2885 }
 0x23a   : > { %v2888_v17 = vunpack.i.h.bf16 %v3540_v7  ;;  %v2887_v18 = vunpack.i.l.bf16 %v3540_v7 }
 0x23c   : > { %v1596_v7 = vsel %vm1594_vm3, %v1587_v5, %v2888_v17  ;;  %v1595_v14 = vsel %vm1594_vm3, %v1586_v8, %v2887_v18 }
 0x241   : > { %v3561_v59 = vpop.permute.xlu1 %2890 }
 0x242   : > { %v2893_v51 = vunpack.i.h.bf16 %v3561_v59  ;;  %v2892_v53 = vunpack.i.l.bf16 %v3561_v59 }
 0x244   : > { %v1597_v10 = vsel %vm1594_vm3, %v1588_v46, %v2892_v53 }
 0x249   : > { %v3544_v33 = vpop.permute.xlu0 %2895 }
 0x24a   : > { %v2898_v0 = vunpack.i.h.bf16 %v3544_v33  ;;  %v2897_v63 = vunpack.i.l.bf16 %v3544_v33 }
 0x251   : > { %v3580_v56 = vpop.permute.xlu1 %2900 }
 0x259   : > { %v2906_v60 = vpop.permute.xlu0 %2905 }
 0x25a   : > { %v2908_v21 = vunpack.i.h.bf16 %v2906_v60  ;;  %v2907_v22 = vunpack.i.l.bf16 %v2906_v60 }
 0x25c   : > { %v1605_v37 = vsel %vm1603_vm4, %v1596_v7, %v2908_v21  ;;  %v1604_v40 = vsel %vm1603_vm4, %v1595_v14, %v2907_v22  ;;  %v1599_v21 = vsel %vm1594_vm3, %v1590_v43, %v2897_v63 }
 0x261   : > { %v2911_v12 = vpop.permute.xlu1 %2910 }
 0x262   : > { %v2913_v26 = vunpack.i.h.bf16 %v2911_v12  ;;  %v2912_v47 = vunpack.i.l.bf16 %v2911_v12 }
 0x269   : > { %v3582_v13 = vpop.permute.xlu0 %2915 }
 0x26a   : > { %v2918_v33 = vunpack.i.h.bf16 %v3582_v13 }
 0x271   : > { %v3608_v54 = vpop.permute.xlu1 %2920 }
 0x279   : > { %v2926_v15 = vpop.permute.xlu0 %2925 }
 0x27a   : > { %v2928_v16 = vunpack.i.h.bf16 %v2926_v15  ;;  %v2927_v27 = vunpack.i.l.bf16 %v2926_v15 }
 0x27c   : > { %v1614_v49 = vsel %vm1612_vm5, %v1605_v37, %v2928_v16  ;;  %v1613_v50 = vsel %vm1612_vm5, %v1604_v40, %v2927_v27 }
 0x27d   : > { %v1623_v60 = vsel %vm1621_vm6, %v1614_v49, %v2808_v36  ;;  %v1622_v29 = vsel %vm1621_vm6, %v1613_v50, %v2807_v42  ;;  %v2931_v25 = vpop.permute.xlu0 %2930  ;;  %v1591_v36 = vsel %vm1585_vm2, %v1582_v24, %v2878_v1  ;;  %v2882_v49 = vunpack.i.l.bf16 %v3542_v31 }
 0x27e   : > { %v1631_v4 = vsel %vm1630_vm7, %v1622_v29, %v2827_v57  ;;  %v1632_v6 = vsel %vm1630_vm7, %v1623_v60, %v2828_v55  ;;  %v2917_v57 = vunpack.i.l.bf16 %v3582_v13  ;;  %v1598_v55 = vsel %vm1594_vm3, %v1589_v28, %v2893_v51 }
 0x27f   : > { %v2537_v42 = vpack.c.bf16 %v1632_v6, %v1631_v4  ;;  %v2933_v11 = vunpack.i.h.bf16 %v2931_v25  ;;  %v2932_v17 = vunpack.i.l.bf16 %v2931_v25  ;;  %v1600_v20 = vsel %vm1594_vm3, %v1591_v36, %v2898_v0 }
 0x280   : > { %v1607_v24 = vsel %vm1603_vm4, %v1598_v55, %v2913_v26  ;;  %v1606_v13 = vsel %vm1603_vm4, %v1597_v10, %v2912_v47  ;;  %v1609_v5 = vsel %vm1603_vm4, %v1600_v20, %v2918_v33  ;;  %v1608_v8 = vsel %vm1603_vm4, %v1599_v21, %v2917_v57  ;;  %v2527_v10 = vld [vmem:[%s3864_s3] ss:$0 sm:$0xff] }
 0x281   : > { %v2946_v18 = vpop.permute.xlu0 %2945  ;;  %2641 = vmatprep.mubr.msk.bf16.mxu1 %vm3622_vm9, %v2537_v42  ;;  %v2936_v19 = vpop.permute.xlu1 %2935  ;;  %v1618_v7 = vsel %vm1612_vm5, %v1609_v5, %v2933_v11  ;;  %v1617_v14 = vsel %vm1612_vm5, %v1608_v8, %v2932_v17  ;;  %v2902_v51 = vunpack.i.l.bf16 %v3580_v56  ;;  %v2923_v31 = vunpack.i.h.bf16 %v3608_v54 }
 0x282   : > { %v2938_v22 = vunpack.i.h.bf16 %v2936_v19  ;;  %v2937_v23 = vunpack.i.l.bf16 %v2936_v19  ;;  %v2948_v30 = vunpack.i.h.bf16 %v2946_v18  ;;  %v2947_v32 = vunpack.i.l.bf16 %v2946_v18 }
 0x283   : > { %v3237_v55 = vmov 0.0  }
 0x284   : > { %v1616_v12 = vsel %vm1612_vm5, %v1607_v24, %v2938_v22  ;;  %v1615_v15 = vsel %vm1612_vm5, %v1606_v13, %v2937_v23  ;;  %v1627_v62 = vsel %vm1621_vm6, %v1618_v7, %v2948_v30  ;;  %2649 = vmatprep.subr.bf16.mxu1 %v3237_v55 }
 0x285   : > { %v1625_v16 = vsel %vm1621_vm6, %v1616_v12, %v2813_v44  ;;  %v1624_v27 = vsel %vm1621_vm6, %v1615_v15, %v2812_v45  ;;  %v2956_v28 = vpop.permute.xlu0 %2955  ;;  %v2941_v1 = vpop.permute.xlu1 %2940  ;;  %v1626_v44 = vsel %vm1621_vm6, %v1617_v14, %v2947_v32  ;;  %v2903_v45 = vunpack.i.h.bf16 %v3580_v56 }
 0x286   : > { %v1634_v37 = vsel %vm1630_vm7, %v1625_v16, %v2838_v34  ;;  %v1633_v40 = vsel %vm1630_vm7, %v1624_v27, %v2837_v3  ;;  %v2958_v46 = vunpack.i.h.bf16 %v2956_v28  ;;  %v2957_v48 = vunpack.i.l.bf16 %v2956_v28 }
 0x287   : > { %v2540_v50 = vpack.c.bf16 %v1634_v37, %v1633_v40  ;;  %v2922_v3 = vunpack.i.l.bf16 %v3608_v54  ;;  %v1584_v56 = vsel %vm1576_vm1, %v3571_v61, %v2863_v2  ;;  %v2943_v25 = vunpack.i.h.bf16 %v2941_v1 }
 0x288   : > { %v1635_v53 = vsel %vm1630_vm7, %v1626_v44, %v2957_v48  ;;  %v1636_v34 = vsel %vm1630_vm7, %v1627_v62, %v2958_v46  ;;  %v2942_v52 = vunpack.i.l.bf16 %v2941_v1  ;;  %v1593_v38 = vsel %vm1585_vm2, %v1584_v56, %v2883_v9 }
 0x289   : > { %v2543_v60 = vpack.c.bf16 %v1636_v34, %v1635_v53  ;;  %v2951_v29 = vpop.permute.xlu1 %2950  ;;  %2642 = vmatmul.mubr.msk.bf16.vlgmr.msra.gmra.mrb[40].mxu1 %vm3622_vm9, %v2540_v50  ;;  %v1592_v54 = vsel %vm1585_vm2, %v1583_v41, %v2882_v49  ;;  %v1602_v4 = vsel %vm1594_vm3, %v1593_v38, %v2903_v45  ;;  %vm2093_vm1 = vcmask 523264  }
 0x28a   : > { %v2953_v0 = vunpack.i.h.bf16 %v2951_v29  ;;  %v2952_v63 = vunpack.i.l.bf16 %v2951_v29  ;;  %v1601_v6 = vsel %vm1594_vm3, %v1592_v54, %v2902_v51  ;;  %v1611_v61 = vsel %vm1603_vm4, %v1602_v4, %v2923_v31 }
 0x28b   : > { %2645 = vmatprep.mubr.msk.bf16.mxu1 %vm3622_vm9, %v2543_v60  ;;  %v1610_v58 = vsel %vm1603_vm4, %v1601_v6, %v2922_v3  ;;  %v1620_v35 = vsel %vm1612_vm5, %v1611_v61, %v2943_v25  ;;  %vm2096_vm2 = vcmask 588800  }
 0x28c   : > { %v1619_v36 = vsel %vm1612_vm5, %v1610_v58, %v2942_v52  ;;  %v1629_v43 = vsel %vm1621_vm6, %v1620_v35, %v2953_v0  ;;  %vm2566_vm3 = vmpackc.low %vm2096_vm2, %vm2096_vm2 }
 0x28d   : > { %v2961_v2 = vpop.permute.xlu1 %2960  ;;  %v1628_v42 = vsel %vm1621_vm6, %v1619_v36, %v2952_v63 }
 0x28e   : > { %v2963_v26 = vunpack.i.h.bf16 %v2961_v2  ;;  %v2962_v47 = vunpack.i.l.bf16 %v2961_v2 }
 0x290   : > { %v1637_v9 = vsel %vm1630_vm7, %v1628_v42, %v2962_v47  ;;  %v1638_v33 = vsel %vm1630_vm7, %v1629_v43, %v2963_v26 }
 0x291   : > { %v2546_v57 = vpack.c.bf16 %v1638_v33, %v1637_v9  ;;  %v3136_v33 = vld [vmem:[%s3865_s4] sm:$0xff]  }
 0x293   : > { %2646 = vmatmul.mubr.msk.bf16.gmra.mrb[44].mxu1 %vm3622_vm9, %v2546_v57  ;;  %v3137_v57 = vld [vmem:[%s3865_s4 + $0x8] sm:$0xff]  }
 0x294   : > { %2657 = vmatprep.mubr.msk.bf16.mxu1 %vm3238_vm10, %v3237_v55 }
 0x35c   : > { %v2643_v11 = vpop.f32.mrb[40].mxu1 }
 0x35d   : > { %v1766_v17 = vadd.f32 %v2643_v11, %v2527_v10  ;;  %v1757_v18 = vpop.f32.mrb[41].mxu1  ;;  %v3139_v11 = vld [vmem:[%s3865_s4 + $0x18] sm:$0xff]  }
 0x35e   : > { %v1758_v19 = vadd.f32 %v2527_v10, %v1757_v18  ;;  %v2644_v20 = vpop.f32.mrb[42].mxu1  ;;  %v3141_v18 = vld [vmem:[%s3865_s4 + $0x28] sm:$0xff]  }
 0x35f   : > { %v1790_v21 = vmul.f32 0.5, %v1766_v17  ;;  %v1769_v22 = vadd.f32 %v2644_v20, %v2527_v10  ;;  %v1760_v59 = vpop.f32.mrb[43].mxu1  ;;  %v3143_v20 = vld [vmem:[%s3865_s4 + $0x38] sm:$0xff]  }
 0x360   : > { %v1788_v23 = vmul.f32 0.5, %v1758_v19  ;;  %v1761_v24 = vadd.f32 %v2527_v10, %v1760_v59  ;;  %v3146_v59 = vld [vmem:[%s3866_s5 + $0x8] sm:$0xff]  }
 0x361   : > { %3161 = vtanh.f32 %v1790_v21  ;;  %v1791_v13 = vmul.f32 0.5, %v1769_v22  ;;  %v3144_v21 = vld [vmem:[%s3865_s4 + $0x40] sm:$0xff]  }
 0x362   : > { %3163 = vtanh.f32 %v1788_v23  ;;  %v1789_v30 = vmul.f32 0.5, %v1761_v24 }
 0x363   : > { %3165 = vtanh.f32 %v1791_v13 }
 0x364   : > { %3167 = vtanh.f32 %v1789_v30 }
 0x366   : > { %v2647_v32 = vpop.f32.mrb[44].mxu1 }
 0x367   : > { %v1782_v5 = vadd.f32 %v2647_v32, %v2527_v10  ;;  %v1773_v8 = vpop.f32.mrb[45].mxu1 }
 0x368   : > { %v1774_v12 = vadd.f32 %v2527_v10, %v1773_v8  ;;  %v2648_v15 = vpop.f32.mrb[46].mxu1 }
 0x369   : > { %v1794_v7 = vmul.f32 0.5, %v1782_v5  ;;  %v1785_v14 = vadd.f32 %v2648_v15, %v2527_v10  ;;  %v1776_v16 = vpop.f32.mrb[47].mxu1 }
 0x36a   : > { %v1792_v27 = vmul.f32 0.5, %v1774_v12  ;;  %v1777_v28 = vadd.f32 %v2527_v10, %v1776_v16  ;;  %v3138_v10 = vld [vmem:[%s3865_s4 + $0x10] sm:$0xff]  }
 0x36b   : > { %v3162_v1 = vpop.eup %3161  ;;  %3169 = vtanh.f32 %v1794_v7  ;;  %v1795_v37 = vmul.f32 0.5, %v1785_v14 }
 0x36c   : > { %v3164_v40 = vpop.eup %3163  ;;  %v1806_v46 = vadd.f32 1.0, %v3162_v1  ;;  %3171 = vtanh.f32 %v1792_v27  ;;  %v1793_v48 = vmul.f32 0.5, %v1777_v28 }
 0x36d   : > { %v3166_v49 = vpop.eup %3165  ;;  %v1804_v44 = vadd.f32 1.0, %v3164_v40  ;;  %3173 = vtanh.f32 %v1795_v37 }
 0x36e   : > { %v3168_v62 = vpop.eup %3167  ;;  %v1814_v50 = vmul.f32 0.5, %v1806_v46  ;;  %v1807_v45 = vadd.f32 1.0, %v3166_v49  ;;  %3175 = vtanh.f32 %v1793_v48  ;;  %v3149_v49 = vld [vmem:[%s3866_s5 + $0x20] sm:$0xff]  }
 0x36f   : > { %v1812_v51 = vmul.f32 0.5, %v1804_v44  ;;  %v1805_v53 = vadd.f32 1.0, %v3168_v62 }
 0x370   : > { %v1815_v34 = vmul.f32 0.5, %v1807_v45  ;;  %v1822_v31 = vmul.f32 %v1814_v50, %v1766_v17  ;;  %v3140_v17 = vld [vmem:[%s3865_s4 + $0x20] sm:$0xff]  }
 0x371   : > { %v1813_v39 = vmul.f32 0.5, %v1805_v53  ;;  %v1820_v60 = vmul.f32 %v1812_v51, %v1758_v19  ;;  %v3142_v19 = vld [vmem:[%s3865_s4 + $0x30] sm:$0xff]   ;;  %v3150_v53 = vld [vmem:[%s3866_s5 + $0x28] sm:$0xff]  }
 0x372   : > { %v1823_v3 = vmul.f32 %v1815_v34, %v1769_v22  ;;  %v3145_v22 = vld [vmem:[%s3866_s5] sm:$0xff]  }
 0x373   : > { %v1821_v29 = vmul.f32 %v1813_v39, %v1761_v24 }
 0x374   : > { %v1829_v56 = vpack.c.bf16 %v1823_v3, %v1822_v31 }
 0x375   : > { %v3170_v41 = vpop.eup %3169  ;;  %v1828_v25 = vpack.c.bf16 %v1821_v29, %v1820_v60  ;;  %v3151_v29 = vld [vmem:[%s3866_s5 + $0x30] sm:$0xff]  }
 0x376   : > { %v3172_v52 = vpop.eup %3171  ;;  %v1810_v38 = vadd.f32 1.0, %v3170_v41 }
 0x377   : > { %v3174_v54 = vpop.eup %3173  ;;  %v1808_v0 = vadd.f32 1.0, %v3172_v52  ;;  %2650 = vmatpush3.bf16.msra.mxu1 %v1828_v25 }
 0x378   : > { %v3176_v63 = vpop.eup %3175  ;;  %v1818_v4 = vmul.f32 0.5, %v1810_v38  ;;  %v1811_v6 = vadd.f32 1.0, %v3174_v54  ;;  %2651 = vmatprep.subr.bf16.mxu1 %v3237_v55  ;;  %v3152_v54 = vld [vmem:[%s3866_s5 + $0x38] sm:$0xff]  }
 0x379   : > { %v1816_v61 = vmul.f32 0.5, %v1808_v0  ;;  %v1809_v58 = vadd.f32 1.0, %v3176_v63 }
 0x37a   : > { %v1819_v2 = vmul.f32 0.5, %v1811_v6  ;;  %v1826_v36 = vmul.f32 %v1818_v4, %v1782_v5 }
 0x37b   : > { %v1817_v35 = vmul.f32 0.5, %v1809_v58  ;;  %2652 = vmatpush3.bf16.msra.mxu1 %v1829_v56  ;;  %v1824_v47 = vmul.f32 %v1816_v61, %v1774_v12  ;;  %v3147_v12 = vld [vmem:[%s3866_s5 + $0x10] sm:$0xff]  }
 0x37c   : > { %v1827_v26 = vmul.f32 %v1819_v2, %v1785_v14  ;;  %2653 = vmatprep.subr.bf16.mxu1 %v3237_v55 }
 0x37d   : > { %v1825_v42 = vmul.f32 %v1817_v35, %v1777_v28  ;;  %v3148_v28 = vld [vmem:[%s3866_s5 + $0x18] sm:$0xff]  }
 0x37e   : > { %v1831_v43 = vpack.c.bf16 %v1827_v26, %v1826_v36 }
 0x37f   : > { %v1830_v9 = vpack.c.bf16 %v1825_v42, %v1824_v47 }
 0x381   : > { %2654 = vmatpush3.bf16.msra.mxu1 %v1830_v9 }
 0x382   : > { %2655 = vmatprep.subr.bf16.mxu1 %v3237_v55 }
 0x385   : > { %2656 = vmatpush3.bf16.msra.mxu1 %v1831_v43 }
 0x386   : > { %2693 = vmatprep.subr.bf16.mxu1 %v3237_v55 }
 0x388   : > { %2658 = vmatmul.mubr.bf16.vlgmr.msra.gmra.mrb[48].mxu1 %v3136_v33 }
 0x389   : > { %2661 = vmatprep.mubr.msk.bf16.mxu1 %vm3238_vm10, %v3237_v55  ;;  %2694 = vmatpush3.bf16.msra.mxu1 %v3145_v22 }
 0x38a   : > { %2695 = vmatprep.subr.bf16.mxu1 %v3237_v55 }
 0x38d   : > { %2696 = vmatpush3.bf16.msra.mxu1 %v3146_v59 }
 0x38e   : > { %2697 = vmatprep.subr.bf16.mxu1 %v3237_v55 }
 0x390   : > { %2662 = vmatmul.mubr.bf16.gmra.mrb[52].mxu1 %v3137_v57 }
 0x391   : > { %2665 = vmatprep.mubr.msk.bf16.mxu1 %vm3238_vm10, %v3237_v55  ;;  %2698 = vmatpush3.bf16.msra.mxu1 %v3147_v12 }
 0x392   : > { %2699 = vmatprep.subr.bf16.mxu1 %v3237_v55 }
 0x395   : > { %2700 = vmatpush3.bf16.msra.mxu1 %v3148_v28 }
 0x396   : > { %2701 = vmatprep.subr.bf16.mxu1 %v3237_v55 }
 0x398   : > { %2666 = vmatmul.mubr.bf16.gmra.mrb[56].mxu1 %v3138_v10 }
 0x399   : > { %2669 = vmatprep.mubr.msk.bf16.mxu1 %vm3238_vm10, %v3237_v55  ;;  %2702 = vmatpush3.bf16.msra.mxu1 %v3149_v49 }
 0x39a   : > { %2703 = vmatprep.subr.bf16.mxu1 %v3237_v55 }
 0x39d   : > { %2704 = vmatpush3.bf16.msra.mxu1 %v3150_v53 }
 0x39e   : > { %2705 = vmatprep.subr.bf16.mxu1 %v3237_v55 }
 0x3a0   : > { %2670 = vmatmul.mubr.bf16.gmra.mrb[60].mxu1 %v3139_v11 }
 0x3a1   : > { %2673 = vmatprep.mubr.msk.bf16.mxu1 %vm3238_vm10, %v3237_v55  ;;  %2706 = vmatpush3.bf16.msra.mxu1 %v3151_v29  ;;  %v3156_v29 = vld [vmem:[%s3868_s7 + $0x18] sm:$0xff]  }
 0x3a2   : > { %2707 = vmatprep.subr.bf16.mxu1 %v3237_v55 }
 0x3a5   : > { %2708 = vmatpush3.bf16.msra.mxu1 %v3152_v54 }
 0x3a6   : > { %2713 = vmatprep.subr.bf16.mxu1 %v3237_v55 }
 0x3a8   : > { %2674 = vmatmul.mubr.bf16.gmra.mrb[64].mxu1 %v3140_v17 }
 0x3a9   : > { %2677 = vmatprep.mubr.msk.bf16.mxu1 %vm3238_vm10, %v3237_v55 }
 0x3b0   : > { %2678 = vmatmul.mubr.bf16.gmra.mrb[68].mxu1 %v3141_v18 }
 0x3b1   : > { %2681 = vmatprep.mubr.msk.bf16.mxu1 %vm3238_vm10, %v3237_v55 }
 0x3b8   : > { %2682 = vmatmul.mubr.bf16.gmra.mrb[72].mxu1 %v3142_v19 }
 0x3b9   : > { %2685 = vmatprep.mubr.msk.bf16.mxu1 %vm3238_vm10, %v3237_v55 }
 0x3c0   : > { %2686 = vmatmul.mubr.bf16.gmra.mrb[76].mxu1 %v3143_v20 }
 0x3c1   : > { %2689 = vmatprep.mubr.msk.bf16.mxu1 %vm3238_vm10, %v3237_v55 }
 0x3c8   : > { %2690 = vmatmul.mubr.bf16.gmra.mrb[80].mxu1 %v3144_v21 }
 0x3c9   : > { %2709 = vmatprep.mubr.msk.bf16.mxu1 %vm3238_vm10, %v3237_v55 }
 0x45b   : > { %v3758_v23 = vpop.f32.mrb[48].mxu1 }
 0x45c   : > { %v2659_v24 = vpop.f32.mrb[49].mxu1 }
 0x45d   : > { %v3760_v13 = vpop.f32.mrb[50].mxu1 }
 0x45e   : > { %v2660_v30 = vpop.f32.mrb[51].mxu1 }
 0x463   : > { %v1946_v32 = vpop.f32.mrb[52].mxu1 }
 0x464   : > { %v2663_v5 = vpop.f32.mrb[53].mxu1 }
 0x465   : > { %v1949_v8 = vpop.f32.mrb[54].mxu1 }
 0x466   : > { %v2964_v15 = vpack.i.bf16 %v1949_v8, %v1946_v32  ;;  %v2664_v7 = vpop.f32.mrb[55].mxu1 }
 0x468   : > { %2965 = vrot.lane.b32.xlu0 %v2964_v15, %s3239_s15  ;;  %s3245_s15 = smov 64  }
 0x46b   : > { %v1954_v14 = vpop.f32.mrb[56].mxu1 }
 0x46c   : > { %v2667_v16 = vpop.f32.mrb[57].mxu1 }
 0x46d   : > { %v1957_v27 = vpop.f32.mrb[58].mxu1 }
 0x46e   : > { %v2969_v1 = vpack.i.bf16 %v1957_v27, %v1954_v14  ;;  %v2668_v37 = vpop.f32.mrb[59].mxu1 }
 0x470   : > { %2970 = vrot.lane.b32.xlu1 %v2969_v1, %s3240_s18 }
 0x473   : > { %v1962_v40 = vpop.f32.mrb[60].mxu1 }
 0x474   : > { %v2671_v46 = vpop.f32.mrb[61].mxu1 }
 0x475   : > { %v1965_v48 = vpop.f32.mrb[62].mxu1 }
 0x476   : > { %v2974_v44 = vpack.i.bf16 %v1965_v48, %v1962_v40  ;;  %v2672_v62 = vpop.f32.mrb[63].mxu1 }
 0x478   : > { %2975 = vrot.lane.b32.xlu0 %v2974_v44, %s3231_s29 }
 0x47b   : > { %v1970_v50 = vpop.f32.mrb[64].mxu1 }
 0x47c   : > { %v2675_v45 = vpop.f32.mrb[65].mxu1 }
 0x47d   : > { %v1973_v51 = vpop.f32.mrb[66].mxu1 }
 0x47e   : > { %v2979_v34 = vpack.i.bf16 %v1973_v51, %v1970_v50  ;;  %v2676_v39 = vpop.f32.mrb[67].mxu1 }
 0x47f   : > { %v3153_v39 = vld [vmem:[%s3868_s7] sm:$0xff]  }
 0x480   : > { %2980 = vrot.lane.b32.xlu1 %v2979_v34, %s3241_s24 }
 0x483   : > { %v1978_v31 = vpop.f32.mrb[68].mxu1 }
 0x484   : > { %v2679_v3 = vpop.f32.mrb[69].mxu1 }
 0x485   : > { %v1981_v60 = vpop.f32.mrb[70].mxu1  ;;  %v3154_v3 = vld [vmem:[%s3868_s7 + $0x8] sm:$0xff]  }
 0x486   : > { %v2984_v56 = vpack.i.bf16 %v1981_v60, %v1978_v31  ;;  %v2680_v41 = vpop.f32.mrb[71].mxu1  ;;  %v3155_v60 = vld [vmem:[%s3868_s7 + $0x10] sm:$0xff]  }
 0x487   : > { %v3158_v41 = vld [vmem:[%s3868_s7 + $0x28] sm:$0xff]  }
 0x488   : > { %2985 = vrot.lane.b32.xlu0 %v2984_v56, %s3242_s26  ;;  %v3157_v56 = vld [vmem:[%s3868_s7 + $0x20] sm:$0xff]  }
 0x48b   : > { %v1986_v25 = vpop.f32.mrb[72].mxu1 }
 0x48c   : > { %v2683_v52 = vpop.f32.mrb[73].mxu1 }
 0x48d   : > { %v1989_v38 = vpop.f32.mrb[74].mxu1  ;;  %v3160_v52 = vld [vmem:[%s3868_s7 + $0x38] sm:$0xff]  }
 0x48e   : > { %v2989_v0 = vpack.i.bf16 %v1989_v38, %v1986_v25  ;;  %v2684_v63 = vpop.f32.mrb[75].mxu1  ;;  %v3159_v25 = vld [vmem:[%s3868_s7 + $0x30] sm:$0xff]   ;;  %v2557_v38 = vld [vmem:[%s3867_s6] ss:$0 sm:$0xff] }
 0x490   : > { %2990 = vrot.lane.b32.xlu1 %v2989_v0, %s3243_s13 }
 0x493   : > { %v1994_v4 = vpop.f32.mrb[76].mxu1 }
 0x494   : > { %v2687_v6 = vpop.f32.mrb[77].mxu1 }
 0x495   : > { %v1997_v61 = vpop.f32.mrb[78].mxu1 }
 0x496   : > { %v2994_v58 = vpack.i.bf16 %v1997_v61, %v1994_v4  ;;  %v2688_v2 = vpop.f32.mrb[79].mxu1 }
 0x498   : > { %2995 = vrot.lane.b32.xlu0 %v2994_v58, %s3244_s14 }
 0x49b   : > { %v2002_v35 = vpop.f32.mrb[80].mxu1 }
 0x49c   : > { %v2691_v36 = vpop.f32.mrb[81].mxu1 }
 0x49d   : > { %v2005_v26 = vpop.f32.mrb[82].mxu1 }
 0x49e   : > { %v2999_v47 = vpack.i.bf16 %v2005_v26, %v2002_v35  ;;  %v2692_v42 = vpop.f32.mrb[83].mxu1 }
 0x4a0   : > { %3000 = vrot.lane.b32.xlu1 %v2999_v47, %s3245_s15 }
 0x4da   : > { %v2966_v43 = vpop.permute.xlu0 %2965 }
 0x4db   : > { %v2968_v11 = vunpack.i.h.bf16 %v2966_v43  ;;  %v2967_v17 = vunpack.i.l.bf16 %v2966_v43 }
 0x4dd   : > { %v2075_v32 = vsel %vm2073_vm11, %v3760_v13, %v2968_v11  ;;  %v2074_v5 = vsel %vm2073_vm11, %v3758_v23, %v2967_v17 }
 0x4e2   : > { %v2971_v9 = vpop.permute.xlu1 %2970 }
 0x4e3   : > { %v2973_v18 = vunpack.i.h.bf16 %v2971_v9  ;;  %v2972_v19 = vunpack.i.l.bf16 %v2971_v9 }
 0x4e5   : > { %v2078_v15 = vsel %vm2076_vm12, %v2075_v32, %v2973_v18  ;;  %v2077_v7 = vsel %vm2076_vm12, %v2074_v5, %v2972_v19  ;;  %v2343_v32 = vld [vmem:[%s3870_s9] sm:$0xff] }
 0x4ea   : > { %v2976_v33 = vpop.permute.xlu0 %2975 }
 0x4eb   : > { %v2978_v20 = vunpack.i.h.bf16 %v2976_v33  ;;  %v2977_v21 = vunpack.i.l.bf16 %v2976_v33 }
 0x4ed   : > { %v2080_v27 = vsel %vm1630_vm7, %v2078_v15, %v2978_v20  ;;  %v2079_v28 = vsel %vm1630_vm7, %v2077_v7, %v2977_v21  ;;  %v2351_v15 = vld [vmem:[%s3872_s11] sm:$0xff]  ;;  %v2344_v7 = vld [vmem:[%s3870_s9 + $0x8] sm:$0xff] }
 0x4f2   : > { %v2981_v57 = vpop.permute.xlu1 %2980 }
 0x4f3   : > { %v2983_v59 = vunpack.i.h.bf16 %v2981_v57  ;;  %v2982_v24 = vunpack.i.l.bf16 %v2981_v57  ;;  %v2569_v57 = vld [vmem:[%s3869_s8] ss:$0 sm:$0xff] }
 0x4f5   : > { %v2083_v40 = vsel %vm2081_vm13, %v2080_v27, %v2983_v59  ;;  %v2082_v46 = vsel %vm2081_vm13, %v2079_v28, %v2982_v24  ;;  %v2348_v28 = vld [vmem:[%s3871_s10 + $0x8] sm:$0xff] }
 0x4fa   : > { %v2986_v10 = vpop.permute.xlu0 %2985 }
 0x4fb   : > { %v2988_v8 = vunpack.i.h.bf16 %v2986_v10  ;;  %v2987_v12 = vunpack.i.l.bf16 %v2986_v10 }
 0x4fd   : > { %v2086_v13 = vsel %vm2084_vm14, %v2083_v40, %v2988_v8  ;;  %v2085_v23 = vsel %vm2084_vm14, %v2082_v46, %v2987_v12  ;;  %v2347_v12 = vld [vmem:[%s3871_s10] sm:$0xff] }
 0x502   : > { %v2991_v22 = vpop.permute.xlu1 %2990 }
 0x503   : > { %v2993_v14 = vunpack.i.h.bf16 %v2991_v22  ;;  %v2992_v16 = vunpack.i.l.bf16 %v2991_v22 }
 0x505   : > { %v2089_v49 = vsel %vm2087_vm15, %v2086_v13, %v2993_v14  ;;  %v2088_v44 = vsel %vm2087_vm15, %v2085_v23, %v2992_v16 }
 0x50a   : > { %v2996_v30 = vpop.permute.xlu0 %2995 }
 0x50b   : > { %v2998_v1 = vunpack.i.h.bf16 %v2996_v30  ;;  %v2997_v37 = vunpack.i.l.bf16 %v2996_v30 }
 0x50d   : > { %v2092_v45 = vsel %vm2090_vm0, %v2089_v49, %v2998_v1  ;;  %v2091_v51 = vsel %vm2090_vm0, %v2088_v44, %v2997_v37  ;;  %v2352_v1 = vld [vmem:[%s3872_s11 + $0x8] sm:$0xff] }
 0x512   : > { %v3001_v48 = vpop.permute.xlu1 %3000 }
 0x513   : > { %v3003_v62 = vunpack.i.h.bf16 %v3001_v48  ;;  %v3002_v50 = vunpack.i.l.bf16 %v3001_v48 }
 0x515   : > { %v2095_v53 = vsel %vm2093_vm1, %v2092_v45, %v3003_v62  ;;  %v2094_v34 = vsel %vm2093_vm1, %v2091_v51, %v3002_v50 }
 0x516   : > { %v2567_v31 = vpack.c.bf16 %v2095_v53, %v2094_v34 }
 0x518   : > { %2710 = vmatmul.mubr.msk.bf16.vlgmr.msra.gmra.mrb[84].mxu1 %vm2566_vm3, %v2567_v31 }
 0x519   : > { %2714 = vmatpush3.bf16.msra.mxu1 %v3153_v39  ;;  %2729 = vmatprep.mubr.msk.bf16.mxu1 %vm3238_vm10, %v3237_v55 }
 0x51a   : > { %2715 = vmatprep.subr.bf16.mxu1 %v3237_v55 }
 0x51d   : > { %2716 = vmatpush3.bf16.msra.mxu1 %v3154_v3 }
 0x51e   : > { %2717 = vmatprep.subr.bf16.mxu1 %v3237_v55 }
 0x521   : > { %2718 = vmatpush3.bf16.msra.mxu1 %v3155_v60 }
 0x522   : > { %2719 = vmatprep.subr.bf16.mxu1 %v3237_v55 }
 0x525   : > { %2720 = vmatpush3.bf16.msra.mxu1 %v3156_v29 }
 0x526   : > { %2721 = vmatprep.subr.bf16.mxu1 %v3237_v55 }
 0x529   : > { %2722 = vmatpush3.bf16.msra.mxu1 %v3157_v56 }
 0x52a   : > { %2723 = vmatprep.subr.bf16.mxu1 %v3237_v55 }
 0x52d   : > { %2724 = vmatpush3.bf16.msra.mxu1 %v3158_v41 }
 0x52e   : > { %2725 = vmatprep.subr.bf16.mxu1 %v3237_v55 }
 0x531   : > { %2726 = vmatpush3.bf16.msra.mxu1 %v3159_v25 }
 0x532   : > { %2727 = vmatprep.subr.bf16.mxu1 %v3237_v55 }
 0x535   : > { %2728 = vmatpush3.bf16.msra.mxu1 %v3160_v52 }
 0x5eb   : > { %v2205_v54 = vpop.f32.mrb[84].mxu1 }
 0x5ec   : > { %v2206_v0 = vadd.f32 %v2557_v38, %v2205_v54  ;;  %v2711_v63 = vpop.f32.mrb[85].mxu1 }
 0x5ed   : > { %v2208_v4 = vpop.f32.mrb[86].mxu1 }
 0x5ee   : > { %v2212_v6 = vmul.f32 0.5, %v2206_v0  ;;  %v2209_v61 = vadd.f32 %v2557_v38, %v2208_v4  ;;  %v2712_v58 = vpop.f32.mrb[87].mxu1 }
 0x5f0   : > { %3177 = vtanh.f32 %v2212_v6  ;;  %v2213_v2 = vmul.f32 0.5, %v2209_v61 }
 0x5f2   : > { %3179 = vtanh.f32 %v2213_v2 }
 0x5fa   : > { %v3178_v55 = vpop.eup %3177 }
 0x5fb   : > { %v2216_v35 = vadd.f32 1.0, %v3178_v55 }
 0x5fc   : > { %v3180_v36 = vpop.eup %3179 }
 0x5fd   : > { %v2218_v26 = vmul.f32 0.5, %v2216_v35  ;;  %v2217_v47 = vadd.f32 1.0, %v3180_v36 }
 0x5ff   : > { %v2219_v42 = vmul.f32 0.5, %v2217_v47  ;;  %v2220_v43 = vmul.f32 %v2218_v26, %v2206_v0 }
 0x601   : > { %v2221_v9 = vmul.f32 %v2219_v42, %v2209_v61 }
 0x603   : > { %v2222_v33 = vpack.c.bf16 %v2221_v9, %v2220_v43 }
 0x605   : > { %2730 = vmatmul.mubr.bf16.vlgmr.msra.gmra.mrb[88].mxu1 %v2222_v33 }
 0x6d8   : > { %v2328_v10 = vpop.f32.mrb[88].mxu1 }
 0x6d9   : > { %v2329_v11 = vadd.f32 %v2569_v57, %v2328_v10  ;;  %v2731_v17 = vpop.f32.mrb[89].mxu1 }
 0x6da   : > { %v2331_v18 = vpop.f32.mrb[90].mxu1 }
 0x6db   : > { %v2335_v19 = vmul.f32 0.5, %v2329_v11  ;;  %v2332_v20 = vadd.f32 %v2569_v57, %v2331_v18  ;;  %v2732_v21 = vpop.f32.mrb[91].mxu1 }
 0x6dd   : > { %3181 = vtanh.f32 %v2335_v19  ;;  %v2336_v22 = vmul.f32 0.5, %v2332_v20 }
 0x6df   : > { %3183 = vtanh.f32 %v2336_v22 }
 0x6e7   : > { %v3182_v59 = vpop.eup %3181 }
 0x6e8   : > { %v2339_v24 = vadd.f32 1.0, %v3182_v59 }
 0x6e9   : > { %v3184_v30 = vpop.eup %3183 }
 0x6ea   : > { %v2341_v5 = vmul.f32 0.5, %v2339_v24  ;;  %v2340_v8 = vadd.f32 1.0, %v3184_v30 }
 0x6ec   : > { %v2345_v14 = vmul.f32 %v2343_v32, %v2341_v5  ;;  %v2353_v16 = vmul.f32 %v2341_v5, %v2341_v5  ;;  %v2342_v27 = vmul.f32 0.5, %v2340_v8 }
 0x6ee   : > { %v2349_v37 = vadd.f32 %v2347_v12, %v2345_v14  ;;  %v2355_v40 = vmul.f32 %v2353_v16, %v2351_v15  ;;  %v2346_v46 = vmul.f32 %v2344_v7, %v2342_v27  ;;  %v2354_v13 = vmul.f32 %v2342_v27, %v2342_v27 }
 0x6f0   : > { %v2357_v23 = vadd.f32 %v2355_v40, %v2349_v37  ;;  %v2350_v48 = vadd.f32 %v2348_v28, %v2346_v46  ;;  %v2356_v49 = vmul.f32 %v2354_v13, %v2352_v1 }
 0x6f2   : > { %2359 = vst [vmem:[%s428_s27] sm:$0xff] %v2357_v23  ;;  %v2358_v44 = vadd.f32 %v2356_v49, %v2350_v48 }
 0x6f4   : > { %2360 = vst [vmem:[%s428_s27 + $0x8] sm:$0xff] %v2358_v44 }
 0x6f5 PF: > { %s23_s21 = sadd.s32 1, %s3223_s21  }
 0x6f6   : > { %p20_p3 = scmp.ge.s32.totalorder %s23_s21, 4  }
 0x6f8   :  { %22 = sbr.rel (!%p20_p3) target bundleno = 1 (0x1), region = 103 }
 0x6ff   :  { %2382 = vsyncpa [#allocation3], 1 }
 0x700   :  { %2384 = vsyncpa [#allocation3 + $0x1], 1 }

</bundles_post_ra>
